<compile_context>
chip_gen: v5e
topology: v5e:2x2
jax: 0.10.0
libtpu: 0.0.40
codegen_flags: <defaults>
</compile_context>

<pallas_src>
import functools

import jax
import jax.numpy as jnp
from jax.experimental import pallas as pl
from jax.experimental.pallas import tpu as pltpu

# ----------------------------- config ---------------------------------------
NUM_NODES = 64      # num_nodes
NUM_FEATS = 32      # num_features (even: similarity splits it in half)
N_HIDDEN = 16       # conf.model['n_hidden']
NUM_CLASSES = 8     # num_classes
K_KNN = 4           # conf.gsl['K']
BETA = 0.1          # conf.training['beta']
INIT_VALUE = 1.0    # conf.training['init_value']  (delta init)
NORMALIZE_E = True  # conf.gsl['normalize']


# --------------------------- in-kernel helpers --------------------------------
def _sym_normalize(adj):
    """D^{-1/2} A D^{-1/2} with row degrees; zero-degree rows -> 0."""
    n = adj.shape[0]
    deg_col = jnp.sum(adj, axis=1, keepdims=True)                       # (n, 1)
    # same row-degree values, laid out along lanes, via a ones-row matmul
    # (avoids transposing a (n, 1) vector)
    ones_row = jnp.ones((1, n), jnp.float32)
    deg_lane = jax.lax.dot_general(
        ones_row, adj, (((1,), (1,)), ((), ())),
        preferred_element_type=jnp.float32)                             # (1, n)
    dinv_col = jnp.where(deg_col > 0.0, jax.lax.rsqrt(deg_col), 0.0)
    dinv_lane = jnp.where(deg_lane > 0.0, jax.lax.rsqrt(deg_lane), 0.0)
    return adj * dinv_col * dinv_lane


def _topk_mask(s, k):
    """Keep exactly the k largest entries per row (ties -> smallest column)."""
    n = s.shape[1]
    col = jax.lax.broadcasted_iota(jnp.int32, s.shape, 1).astype(jnp.float32)
    cur = s
    keep = jnp.zeros_like(s)
    for _ in range(k):
        thr = jnp.max(cur, axis=1, keepdims=True)
        is_max = cur >= thr
        first = jnp.min(jnp.where(is_max, col, float(n)), axis=1, keepdims=True)
        sel = col == first            # exactly one position per row
        keep = jnp.where(sel, 1.0, keep)
        cur = jnp.where(sel, -jnp.inf, cur)
    return jnp.where(keep > 0.0, s, 0.0)


# ------------------------------ fused kernel ----------------------------------
def _grcn_kernel(x_ref, adj_ref, wd1_ref, wd2_ref, delta_ref, unc_ref,
                 w1_ref, b1_ref, w2_ref, b2_ref,
                 out_ref, new_ref, final_ref,
                 *, k, beta, use_uncertainty, normalize_e):
    f32 = jnp.float32
    x = x_ref[...]
    adj = adj_ref[...]

    # ---- graph learner: normalize(Adj) -> 2-layer diagonal GCN -> row L2 ----
    adj_norm = _sym_normalize(adj)
    h = jnp.dot(adj_norm, x * wd1_ref[...], preferred_element_type=f32)
    h = jnp.maximum(h, 0.0)
    emb = jnp.dot(adj_norm, h * wd2_ref[...], preferred_element_type=f32)
    if normalize_e:
        nrm2 = jnp.sum(emb * emb, axis=1, keepdims=True)
        emb = emb * jax.lax.rsqrt(jnp.maximum(nrm2, 1e-24))

    # ---- similarity: sum of the two half-feature inner products == E @ E^T ----
    sim = jax.lax.dot_general(emb, emb, (((1,), (1,)), ((), ())),
                              preferred_element_type=f32)

    # ---- _sparse_graph: KNN -> symmetrize -> optional BetaReLU mask ----------
    knn = _topk_mask(sim, k)
    # TODO(synk): opengsl Symmetry(1) assumed to average A and A^T
    new = 0.5 * (knn + knn.T)
    if use_uncertainty:
        conf = jnp.exp(-unc_ref[...])                       # (1, n): exp(-u[j])
        conf_mat = jnp.where(new > 0.0, conf, 0.0)          # conf * (new > 0)
        weight = jax.nn.sigmoid(conf_mat - delta_ref[...]) * 2.0  # sigmoid/0.5
        mask = jnp.where(weight >= 1.0, weight, beta)              # BetaReLU
        new = new * mask
    final = new + adj                                       # Interpolate(1, 1)
    new_ref[...] = new
    final_ref[...] = final

    # ---- task head: 2-layer GCN on the re-normalized fused graph -------------
    adj_fn = _sym_normalize(final)
    xw1 = jnp.dot(x, w1_ref[...], preferred_element_type=f32) + b1_ref[...]
    h1 = jnp.maximum(jnp.dot(adj_fn, xw1, preferred_element_type=f32), 0.0)
    xw2 = jnp.dot(h1, w2_ref[...], preferred_element_type=f32) + b2_ref[...]
    out_ref[...] = jnp.dot(adj_fn, xw2, preferred_element_type=f32)


# ------------------------------ wrapper ---------------------------------------
def grcn_forward(x, adj, params, uncertainty=None):
    n, _ = x.shape
    c = params["w2"].shape[1]
    use_unc = uncertainty is not None
    unc_row = (uncertainty.reshape(1, n).astype(jnp.float32)
               if use_unc else jnp.zeros((1, n), jnp.float32))

    kernel = functools.partial(_grcn_kernel, k=K_KNN, beta=BETA,
                               use_uncertainty=use_unc,
                               normalize_e=NORMALIZE_E)
    out, adj_new, adj_final = pl.pallas_call(
        kernel,
        # no grid: single invocation, every operand/output is a full-array
        # block resident in VMEM (total ~200 KB at N=64).
        out_shape=(jax.ShapeDtypeStruct((n, c), jnp.float32),
                   jax.ShapeDtypeStruct((n, n), jnp.float32),
                   jax.ShapeDtypeStruct((n, n), jnp.float32)),
        compiler_params=pltpu.CompilerParams(
            vmem_limit_bytes=32 * 1024 * 1024),
    )(x, adj, params["w_diag1"], params["w_diag2"], params["delta"], unc_row,
      params["w1"], params["b1"], params["w2"], params["b2"])

    adjs = {"new": adj_new, "final": adj_final}
    return out, adjs, adj_new


# ------------------------------ main -------------------------------------------
if __name__ == "__main__":
    key = jax.random.PRNGKey(0)
    kx, ka, kw1, kw2, ku = jax.random.split(key, 5)
    n, f = NUM_NODES, NUM_FEATS

    x = jax.random.normal(kx, (n, f), dtype=jnp.float32)
    a = (jax.random.uniform(ka, (n, n)) < 0.1).astype(jnp.float32)
    adj = jnp.clip(a + a.T + jnp.eye(n, dtype=jnp.float32), 0.0, 1.0)
    uncertainty = jax.random.uniform(ku, (n,), dtype=jnp.float32)

    params = {
        # GCNConv_diag weights are initialized to ones in the reference impl
        "w_diag1": jnp.ones((1, f), jnp.float32),
        "w_diag2": jnp.ones((1, f), jnp.float32),
        # delta.data.fill_(init_value)
        "delta": jnp.full((n, 1), INIT_VALUE, dtype=jnp.float32),
        # task GCN parameters (deterministic synthetic init)
        "w1": 0.1 * jax.random.normal(kw1, (f, N_HIDDEN), dtype=jnp.float32),
        "b1": jnp.zeros((1, N_HIDDEN), jnp.float32),
        "w2": 0.1 * jax.random.normal(kw2, (N_HIDDEN, NUM_CLASSES),
                                      dtype=jnp.float32),
        "b2": jnp.zeros((1, NUM_CLASSES), jnp.float32),
    }

    out, adjs, adj_new = grcn_forward(x, adj, params, uncertainty=uncertainty)
    jax.block_until_ready((out, adjs, adj_new))

    assert out.shape == (n, NUM_CLASSES)
    assert adj_new.shape == (n, n)
    assert adjs["final"].shape == (n, n)
    assert bool(jnp.all(jnp.isfinite(out)))
    assert bool(jnp.all(jnp.isfinite(adj_new)))
    print("KERNEL_OK")
</pallas_src>

<mosaic_0001>
module attributes {stable_mosaic.version = 11 : i64} {
  func.func @_grcn_kernel(%arg0: memref<64x32xf32, #tpu.memory_space<vmem>>, %arg1: memref<64x64xf32, #tpu.memory_space<vmem>>, %arg2: memref<1x32xf32, #tpu.memory_space<vmem>>, %arg3: memref<1x32xf32, #tpu.memory_space<vmem>>, %arg4: memref<64x1xf32, #tpu.memory_space<vmem>>, %arg5: memref<1x64xf32, #tpu.memory_space<vmem>>, %arg6: memref<32x16xf32, #tpu.memory_space<vmem>>, %arg7: memref<1x16xf32, #tpu.memory_space<vmem>>, %arg8: memref<16x8xf32, #tpu.memory_space<vmem>>, %arg9: memref<1x8xf32, #tpu.memory_space<vmem>>, %arg10: memref<64x8xf32, #tpu.memory_space<vmem>>, %arg11: memref<64x64xf32, #tpu.memory_space<vmem>>, %arg12: memref<64x64xf32, #tpu.memory_space<vmem>>) attributes {dimension_semantics = [], scalar_prefetch = 0 : i64, scratch_operands = 0 : i64, tpu.core_type = #tpu.core_type<tc>} {
    %c0 = arith.constant 0 : index
    %c0_0 = arith.constant 0 : index
    %0 = vector.load %arg0[%c0, %c0_0] : memref<64x32xf32, #tpu.memory_space<vmem>>, vector<64x32xf32>
    %c0_1 = arith.constant 0 : index
    %c0_2 = arith.constant 0 : index
    %1 = vector.load %arg1[%c0_1, %c0_2] : memref<64x64xf32, #tpu.memory_space<vmem>>, vector<64x64xf32>
    %cst = arith.constant dense<0.000000e+00> : vector<64xf32>
    %2 = vector.multi_reduction <add>, %1, %cst [1] : vector<64x64xf32> to vector<64xf32>
    %3 = vector.shape_cast %2 : vector<64xf32> to vector<64x1xf32>
    %cst_3 = arith.constant 1.000000e+00 : f32
    %4 = vector.broadcast %cst_3 : f32 to vector<1x64xf32>
    %cst_4 = arith.constant dense<0.000000e+00> : vector<1x64xf32>
    %5 = tpu.matmul %4, %1, %cst_4 {dimension_numbers = #tpu.dot_dimension_numbers<[1], [1], [0], [0], [0, 0, 1, 0], [], []>} : vector<1x64xf32>, vector<64x64xf32>, vector<1x64xf32> -> vector<1x64xf32>
    %cst_5 = arith.constant 0.000000e+00 : f32
    %6 = vector.broadcast %cst_5 : f32 to vector<64x1xf32>
    %7 = arith.cmpf ogt, %3, %6 : vector<64x1xf32>
    %8 = math.rsqrt %3 : vector<64x1xf32>
    %cst_6 = arith.constant 0.000000e+00 : f32
    %9 = vector.broadcast %cst_6 : f32 to vector<64x1xf32>
    %10 = arith.select %7, %8, %9 : vector<64x1xi1>, vector<64x1xf32>
    %cst_7 = arith.constant 0.000000e+00 : f32
    %11 = vector.broadcast %cst_7 : f32 to vector<1x64xf32>
    %12 = arith.cmpf ogt, %5, %11 : vector<1x64xf32>
    %13 = math.rsqrt %5 : vector<1x64xf32>
    %cst_8 = arith.constant 0.000000e+00 : f32
    %14 = vector.broadcast %cst_8 : f32 to vector<1x64xf32>
    %15 = arith.select %12, %13, %14 : vector<1x64xi1>, vector<1x64xf32>
    %16 = vector.broadcast %10 : vector<64x1xf32> to vector<64x64xf32>
    %17 = arith.mulf %1, %16 : vector<64x64xf32>
    %18 = vector.broadcast %15 : vector<1x64xf32> to vector<64x64xf32>
    %19 = arith.mulf %17, %18 : vector<64x64xf32>
    %c0_9 = arith.constant 0 : index
    %c0_10 = arith.constant 0 : index
    %20 = vector.load %arg2[%c0_9, %c0_10] : memref<1x32xf32, #tpu.memory_space<vmem>>, vector<1x32xf32>
    %21 = vector.broadcast %20 : vector<1x32xf32> to vector<64x32xf32>
    %22 = arith.mulf %0, %21 : vector<64x32xf32>
    %cst_11 = arith.constant dense<0.000000e+00> : vector<64x32xf32>
    %23 = tpu.matmul %19, %22, %cst_11 {dimension_numbers = #tpu.dot_dimension_numbers<[1], [0], [0], [1], [0, 0, 1, 1], [], []>} : vector<64x64xf32>, vector<64x32xf32>, vector<64x32xf32> -> vector<64x32xf32>
    %cst_12 = arith.constant 0.000000e+00 : f32
    %24 = vector.broadcast %cst_12 : f32 to vector<64x32xf32>
    %25 = arith.maximumf %23, %24 : vector<64x32xf32>
    %c0_13 = arith.constant 0 : index
    %c0_14 = arith.constant 0 : index
    %26 = vector.load %arg3[%c0_13, %c0_14] : memref<1x32xf32, #tpu.memory_space<vmem>>, vector<1x32xf32>
    %27 = vector.broadcast %26 : vector<1x32xf32> to vector<64x32xf32>
    %28 = arith.mulf %25, %27 : vector<64x32xf32>
    %cst_15 = arith.constant dense<0.000000e+00> : vector<64x32xf32>
    %29 = tpu.matmul %19, %28, %cst_15 {dimension_numbers = #tpu.dot_dimension_numbers<[1], [0], [0], [1], [0, 0, 1, 1], [], []>} : vector<64x64xf32>, vector<64x32xf32>, vector<64x32xf32> -> vector<64x32xf32>
    %30 = arith.mulf %29, %29 : vector<64x32xf32>
    %cst_16 = arith.constant dense<0.000000e+00> : vector<64xf32>
    %31 = vector.multi_reduction <add>, %30, %cst_16 [1] : vector<64x32xf32> to vector<64xf32>
    %32 = vector.shape_cast %31 : vector<64xf32> to vector<64x1xf32>
    %cst_17 = arith.constant 1.000000e-24 : f32
    %33 = vector.broadcast %cst_17 : f32 to vector<64x1xf32>
    %34 = arith.maximumf %32, %33 : vector<64x1xf32>
    %35 = math.rsqrt %34 : vector<64x1xf32>
    %36 = vector.broadcast %35 : vector<64x1xf32> to vector<64x32xf32>
    %37 = arith.mulf %29, %36 : vector<64x32xf32>
    %cst_18 = arith.constant dense<0.000000e+00> : vector<64x64xf32>
    %38 = tpu.matmul %37, %37, %cst_18 {dimension_numbers = #tpu.dot_dimension_numbers<[1], [1], [0], [0], [0, 0, 1, 0], [], []>} : vector<64x32xf32>, vector<64x32xf32>, vector<64x64xf32> -> vector<64x64xf32>
    %39 = tpu.iota {dimensions = array<i32: 1>} : vector<64x64xi32>
    %40 = arith.sitofp %39 : vector<64x64xi32> to vector<64x64xf32>
    %cst_19 = arith.constant 0.000000e+00 : f32
    %41 = vector.broadcast %cst_19 : f32 to vector<64x64xf32>
    %cst_20 = arith.constant dense<0xFF800000> : vector<64xf32>
    %42 = vector.multi_reduction <maximumf>, %38, %cst_20 [1] : vector<64x64xf32> to vector<64xf32>
    %43 = vector.shape_cast %42 : vector<64xf32> to vector<64x1xf32>
    %44 = vector.broadcast %43 : vector<64x1xf32> to vector<64x64xf32>
    %45 = arith.cmpf oge, %38, %44 : vector<64x64xf32>
    %cst_21 = arith.constant 6.400000e+01 : f32
    %46 = vector.broadcast %cst_21 : f32 to vector<64x64xf32>
    %47 = arith.select %45, %40, %46 : vector<64x64xi1>, vector<64x64xf32>
    %cst_22 = arith.constant dense<0x7F800000> : vector<64xf32>
    %48 = vector.multi_reduction <minimumf>, %47, %cst_22 [1] : vector<64x64xf32> to vector<64xf32>
    %49 = vector.shape_cast %48 : vector<64xf32> to vector<64x1xf32>
    %50 = vector.broadcast %49 : vector<64x1xf32> to vector<64x64xf32>
    %51 = arith.cmpf oeq, %40, %50 : vector<64x64xf32>
    %cst_23 = arith.constant 1.000000e+00 : f32
    %52 = vector.broadcast %cst_23 : f32 to vector<64x64xf32>
    %53 = arith.select %51, %52, %41 : vector<64x64xi1>, vector<64x64xf32>
    %cst_24 = arith.constant 0xFF800000 : f32
    %54 = vector.broadcast %cst_24 : f32 to vector<64x64xf32>
    %55 = arith.select %51, %54, %38 : vector<64x64xi1>, vector<64x64xf32>
    %cst_25 = arith.constant dense<0xFF800000> : vector<64xf32>
    %56 = vector.multi_reduction <maximumf>, %55, %cst_25 [1] : vector<64x64xf32> to vector<64xf32>
    %57 = vector.shape_cast %56 : vector<64xf32> to vector<64x1xf32>
    %58 = vector.broadcast %57 : vector<64x1xf32> to vector<64x64xf32>
    %59 = arith.cmpf oge, %55, %58 : vector<64x64xf32>
    %cst_26 = arith.constant 6.400000e+01 : f32
    %60 = vector.broadcast %cst_26 : f32 to vector<64x64xf32>
    %61 = arith.select %59, %40, %60 : vector<64x64xi1>, vector<64x64xf32>
    %cst_27 = arith.constant dense<0x7F800000> : vector<64xf32>
    %62 = vector.multi_reduction <minimumf>, %61, %cst_27 [1] : vector<64x64xf32> to vector<64xf32>
    %63 = vector.shape_cast %62 : vector<64xf32> to vector<64x1xf32>
    %64 = vector.broadcast %63 : vector<64x1xf32> to vector<64x64xf32>
    %65 = arith.cmpf oeq, %40, %64 : vector<64x64xf32>
    %cst_28 = arith.constant 1.000000e+00 : f32
    %66 = vector.broadcast %cst_28 : f32 to vector<64x64xf32>
    %67 = arith.select %65, %66, %53 : vector<64x64xi1>, vector<64x64xf32>
    %cst_29 = arith.constant 0xFF800000 : f32
    %68 = vector.broadcast %cst_29 : f32 to vector<64x64xf32>
    %69 = arith.select %65, %68, %55 : vector<64x64xi1>, vector<64x64xf32>
    %cst_30 = arith.constant dense<0xFF800000> : vector<64xf32>
    %70 = vector.multi_reduction <maximumf>, %69, %cst_30 [1] : vector<64x64xf32> to vector<64xf32>
    %71 = vector.shape_cast %70 : vector<64xf32> to vector<64x1xf32>
    %72 = vector.broadcast %71 : vector<64x1xf32> to vector<64x64xf32>
    %73 = arith.cmpf oge, %69, %72 : vector<64x64xf32>
    %cst_31 = arith.constant 6.400000e+01 : f32
    %74 = vector.broadcast %cst_31 : f32 to vector<64x64xf32>
    %75 = arith.select %73, %40, %74 : vector<64x64xi1>, vector<64x64xf32>
    %cst_32 = arith.constant dense<0x7F800000> : vector<64xf32>
    %76 = vector.multi_reduction <minimumf>, %75, %cst_32 [1] : vector<64x64xf32> to vector<64xf32>
    %77 = vector.shape_cast %76 : vector<64xf32> to vector<64x1xf32>
    %78 = vector.broadcast %77 : vector<64x1xf32> to vector<64x64xf32>
    %79 = arith.cmpf oeq, %40, %78 : vector<64x64xf32>
    %cst_33 = arith.constant 1.000000e+00 : f32
    %80 = vector.broadcast %cst_33 : f32 to vector<64x64xf32>
    %81 = arith.select %79, %80, %67 : vector<64x64xi1>, vector<64x64xf32>
    %cst_34 = arith.constant 0xFF800000 : f32
    %82 = vector.broadcast %cst_34 : f32 to vector<64x64xf32>
    %83 = arith.select %79, %82, %69 : vector<64x64xi1>, vector<64x64xf32>
    %cst_35 = arith.constant dense<0xFF800000> : vector<64xf32>
    %84 = vector.multi_reduction <maximumf>, %83, %cst_35 [1] : vector<64x64xf32> to vector<64xf32>
    %85 = vector.shape_cast %84 : vector<64xf32> to vector<64x1xf32>
    %86 = vector.broadcast %85 : vector<64x1xf32> to vector<64x64xf32>
    %87 = arith.cmpf oge, %83, %86 : vector<64x64xf32>
    %cst_36 = arith.constant 6.400000e+01 : f32
    %88 = vector.broadcast %cst_36 : f32 to vector<64x64xf32>
    %89 = arith.select %87, %40, %88 : vector<64x64xi1>, vector<64x64xf32>
    %cst_37 = arith.constant dense<0x7F800000> : vector<64xf32>
    %90 = vector.multi_reduction <minimumf>, %89, %cst_37 [1] : vector<64x64xf32> to vector<64xf32>
    %91 = vector.shape_cast %90 : vector<64xf32> to vector<64x1xf32>
    %92 = vector.broadcast %91 : vector<64x1xf32> to vector<64x64xf32>
    %93 = arith.cmpf oeq, %40, %92 : vector<64x64xf32>
    %cst_38 = arith.constant 1.000000e+00 : f32
    %94 = vector.broadcast %cst_38 : f32 to vector<64x64xf32>
    %95 = arith.select %93, %94, %81 : vector<64x64xi1>, vector<64x64xf32>
    %cst_39 = arith.constant 0.000000e+00 : f32
    %96 = vector.broadcast %cst_39 : f32 to vector<64x64xf32>
    %97 = arith.cmpf ogt, %95, %96 : vector<64x64xf32>
    %cst_40 = arith.constant 0.000000e+00 : f32
    %98 = vector.broadcast %cst_40 : f32 to vector<64x64xf32>
    %99 = arith.select %97, %38, %98 : vector<64x64xi1>, vector<64x64xf32>
    %100 = tpu.transpose %99, [1, 0] : vector<64x64xf32> -> vector<64x64xf32>
    %101 = arith.addf %99, %100 : vector<64x64xf32>
    %cst_41 = arith.constant 5.000000e-01 : f32
    %102 = vector.broadcast %cst_41 : f32 to vector<64x64xf32>
    %103 = arith.mulf %102, %101 : vector<64x64xf32>
    %c0_42 = arith.constant 0 : index
    %c0_43 = arith.constant 0 : index
    %104 = vector.load %arg5[%c0_42, %c0_43] : memref<1x64xf32, #tpu.memory_space<vmem>>, vector<1x64xf32>
    %cst_44 = arith.constant 0.000000e+00 : f32
    %105 = vector.broadcast %cst_44 : f32 to vector<1x64xf32>
    %106 = arith.subf %105, %104 : vector<1x64xf32>
    %107 = math.exp %106 : vector<1x64xf32>
    %cst_45 = arith.constant 0.000000e+00 : f32
    %108 = vector.broadcast %cst_45 : f32 to vector<64x64xf32>
    %109 = arith.cmpf ogt, %103, %108 : vector<64x64xf32>
    %cst_46 = arith.constant 0.000000e+00 : f32
    %110 = vector.shape_cast %107 : vector<1x64xf32> to vector<1x64xf32>
    %111 = vector.broadcast %110 : vector<1x64xf32> to vector<64x64xf32>
    %112 = vector.broadcast %cst_46 : f32 to vector<64x64xf32>
    %113 = arith.select %109, %111, %112 : vector<64x64xi1>, vector<64x64xf32>
    %c0_47 = arith.constant 0 : index
    %c0_48 = arith.constant 0 : index
    %114 = vector.load %arg4[%c0_47, %c0_48] : memref<64x1xf32, #tpu.memory_space<vmem>>, vector<64x1xf32>
    %115 = vector.broadcast %114 : vector<64x1xf32> to vector<64x64xf32>
    %116 = arith.subf %113, %115 : vector<64x64xf32>
    %117 = arith.negf %116 : vector<64x64xf32>
    %118 = math.exp %117 : vector<64x64xf32>
    %cst_49 = arith.constant 1.000000e+00 : f32
    %119 = vector.broadcast %cst_49 : f32 to vector<64x64xf32>
    %120 = arith.addf %119, %118 : vector<64x64xf32>
    %121 = arith.divf %119, %120 : vector<64x64xf32>
    %cst_50 = arith.constant 2.000000e+00 : f32
    %122 = vector.broadcast %cst_50 : f32 to vector<64x64xf32>
    %123 = arith.mulf %121, %122 : vector<64x64xf32>
    %cst_51 = arith.constant 1.000000e+00 : f32
    %124 = vector.broadcast %cst_51 : f32 to vector<64x64xf32>
    %125 = arith.cmpf oge, %123, %124 : vector<64x64xf32>
    %cst_52 = arith.constant 1.000000e-01 : f32
    %126 = vector.broadcast %cst_52 : f32 to vector<64x64xf32>
    %127 = arith.select %125, %123, %126 : vector<64x64xi1>, vector<64x64xf32>
    %128 = arith.mulf %103, %127 : vector<64x64xf32>
    %129 = arith.addf %128, %1 : vector<64x64xf32>
    %c0_53 = arith.constant 0 : index
    %c0_54 = arith.constant 0 : index
    %130 = vector.load %arg11[%c0_53, %c0_54] : memref<64x64xf32, #tpu.memory_space<vmem>>, vector<64x64xf32>
    tpu.vector_store %arg11[%c0_53, %c0_54], %128 {strides = array<i32>} : memref<64x64xf32, #tpu.memory_space<vmem>>, vector<64x64xf32>,
    %c0_55 = arith.constant 0 : index
    %c0_56 = arith.constant 0 : index
    %131 = vector.load %arg12[%c0_55, %c0_56] : memref<64x64xf32, #tpu.memory_space<vmem>>, vector<64x64xf32>
    tpu.vector_store %arg12[%c0_55, %c0_56], %129 {strides = array<i32>} : memref<64x64xf32, #tpu.memory_space<vmem>>, vector<64x64xf32>,
    %cst_57 = arith.constant dense<0.000000e+00> : vector<64xf32>
    %132 = vector.multi_reduction <add>, %129, %cst_57 [1] : vector<64x64xf32> to vector<64xf32>
    %133 = vector.shape_cast %132 : vector<64xf32> to vector<64x1xf32>
    %cst_58 = arith.constant 1.000000e+00 : f32
    %134 = vector.broadcast %cst_58 : f32 to vector<1x64xf32>
    %cst_59 = arith.constant dense<0.000000e+00> : vector<1x64xf32>
    %135 = tpu.matmul %134, %129, %cst_59 {dimension_numbers = #tpu.dot_dimension_numbers<[1], [1], [0], [0], [0, 0, 1, 0], [], []>} : vector<1x64xf32>, vector<64x64xf32>, vector<1x64xf32> -> vector<1x64xf32>
    %cst_60 = arith.constant 0.000000e+00 : f32
    %136 = vector.broadcast %cst_60 : f32 to vector<64x1xf32>
    %137 = arith.cmpf ogt, %133, %136 : vector<64x1xf32>
    %138 = math.rsqrt %133 : vector<64x1xf32>
    %cst_61 = arith.constant 0.000000e+00 : f32
    %139 = vector.broadcast %cst_61 : f32 to vector<64x1xf32>
    %140 = arith.select %137, %138, %139 : vector<64x1xi1>, vector<64x1xf32>
    %cst_62 = arith.constant 0.000000e+00 : f32
    %141 = vector.broadcast %cst_62 : f32 to vector<1x64xf32>
    %142 = arith.cmpf ogt, %135, %141 : vector<1x64xf32>
    %143 = math.rsqrt %135 : vector<1x64xf32>
    %cst_63 = arith.constant 0.000000e+00 : f32
    %144 = vector.broadcast %cst_63 : f32 to vector<1x64xf32>
    %145 = arith.select %142, %143, %144 : vector<1x64xi1>, vector<1x64xf32>
    %146 = vector.broadcast %140 : vector<64x1xf32> to vector<64x64xf32>
    %147 = arith.mulf %129, %146 : vector<64x64xf32>
    %148 = vector.broadcast %145 : vector<1x64xf32> to vector<64x64xf32>
    %149 = arith.mulf %147, %148 : vector<64x64xf32>
    %c0_64 = arith.constant 0 : index
    %c0_65 = arith.constant 0 : index
    %150 = vector.load %arg6[%c0_64, %c0_65] : memref<32x16xf32, #tpu.memory_space<vmem>>, vector<32x16xf32>
    %cst_66 = arith.constant dense<0.000000e+00> : vector<64x16xf32>
    %151 = tpu.matmul %0, %150, %cst_66 {dimension_numbers = #tpu.dot_dimension_numbers<[1], [0], [0], [1], [0, 0, 1, 1], [], []>} : vector<64x32xf32>, vector<32x16xf32>, vector<64x16xf32> -> vector<64x16xf32>
    %c0_67 = arith.constant 0 : index
    %c0_68 = arith.constant 0 : index
    %152 = vector.load %arg7[%c0_67, %c0_68] : memref<1x16xf32, #tpu.memory_space<vmem>>, vector<1x16xf32>
    %153 = vector.broadcast %152 : vector<1x16xf32> to vector<64x16xf32>
    %154 = arith.addf %151, %153 : vector<64x16xf32>
    %cst_69 = arith.constant dense<0.000000e+00> : vector<64x16xf32>
    %155 = tpu.matmul %149, %154, %cst_69 {dimension_numbers = #tpu.dot_dimension_numbers<[1], [0], [0], [1], [0, 0, 1, 1], [], []>} : vector<64x64xf32>, vector<64x16xf32>, vector<64x16xf32> -> vector<64x16xf32>
    %cst_70 = arith.constant 0.000000e+00 : f32
    %156 = vector.broadcast %cst_70 : f32 to vector<64x16xf32>
    %157 = arith.maximumf %155, %156 : vector<64x16xf32>
    %c0_71 = arith.constant 0 : index
    %c0_72 = arith.constant 0 : index
    %158 = vector.load %arg8[%c0_71, %c0_72] : memref<16x8xf32, #tpu.memory_space<vmem>>, vector<16x8xf32>
    %cst_73 = arith.constant dense<0.000000e+00> : vector<64x8xf32>
    %159 = tpu.matmul %157, %158, %cst_73 {dimension_numbers = #tpu.dot_dimension_numbers<[1], [0], [0], [1], [0, 0, 1, 1], [], []>} : vector<64x16xf32>, vector<16x8xf32>, vector<64x8xf32> -> vector<64x8xf32>
    %c0_74 = arith.constant 0 : index
    %c0_75 = arith.constant 0 : index
    %160 = vector.load %arg9[%c0_74, %c0_75] : memref<1x8xf32, #tpu.memory_space<vmem>>, vector<1x8xf32>
    %161 = vector.broadcast %160 : vector<1x8xf32> to vector<64x8xf32>
    %162 = arith.addf %159, %161 : vector<64x8xf32>
    %cst_76 = arith.constant dense<0.000000e+00> : vector<64x8xf32>
    %163 = tpu.matmul %149, %162, %cst_76 {dimension_numbers = #tpu.dot_dimension_numbers<[1], [0], [0], [1], [0, 0, 1, 1], [], []>} : vector<64x64xf32>, vector<64x8xf32>, vector<64x8xf32> -> vector<64x8xf32>
    %c0_77 = arith.constant 0 : index
    %c0_78 = arith.constant 0 : index
    %164 = vector.load %arg10[%c0_77, %c0_78] : memref<64x8xf32, #tpu.memory_space<vmem>>, vector<64x8xf32>
    tpu.vector_store %arg10[%c0_77, %c0_78], %163 {strides = array<i32>} : memref<64x8xf32, #tpu.memory_space<vmem>>, vector<64x8xf32>,
    return
  }
}

</mosaic_0001>

<bundles_post_ra>
// kernel: tpu_custom_call.1
= control target key start
LH: loop header
LB: loop body
LE: loop exit
PB: predicated region body
PF: predicated region fallthrough
CT: control target
= control target key end

     0   :  { %18 = vsyncpa [#allocation3], 0  ;;  %vm56_vm0 = vcmask 523264   ;;  %s3326_s0 = inlined_call_operand.vmem [shape: f32[64,32], index: 0, kind: input, shape index: {}]   ;;  %s3327_s1 = inlined_call_operand.vmem [shape: f32[64,64], index: 1, kind: input, shape index: {}]   ;;  %s3328_s2 = inlined_call_operand.vmem [shape: f32[1,32], index: 2, kind: input, shape index: {}]   ;;  %s3329_s3 = inlined_call_operand.vmem [shape: f32[1,32], index: 3, kind: input, shape index: {}]   ;;  %s3330_s4 = inlined_call_operand.vmem [shape: f32[64,1], index: 4, kind: input, shape index: {}]   ;;  %s3331_s5 = inlined_call_operand.vmem [shape: f32[1,64], index: 5, kind: input, shape index: {}]   ;;  %s3332_s6 = inlined_call_operand.vmem [shape: f32[32,16], index: 6, kind: input, shape index: {}]   ;;  %s3333_s7 = inlined_call_operand.vmem [shape: f32[1,16], index: 7, kind: input, shape index: {}]   ;;  %s3334_s8 = inlined_call_operand.vmem [shape: f32[16,8], index: 8, kind: input, shape index: {}]   ;;  %s3335_s9 = inlined_call_operand.vmem [shape: f32[1,8], index: 9, kind: input, shape index: {}]   ;;  %s3336_s10 = inlined_call_operand.vmem [shape: f32[64,8], index: 10, kind: output, shape index: {0}]   ;;  %s3337_s11 = inlined_call_operand.hbm [shape: f32[64,64], index: 11, kind: output, shape index: {1}]   ;;  %s3338_s12 = inlined_call_operand.hbm [shape: f32[64,64], index: 12, kind: output, shape index: {2}]  }
   0x1   :  { %v2124_v0 = vld [vmem:[%s3327_s1 + $0x38] sm:$0xff]  ;;  %v2131_v1 = vld [vmem:[%s3327_s1 + $0x20] sm:$0xff]  ;;  %v2136_v2 = vld [vmem:[%s3327_s1 + $0x10] sm:$0xff] }
   0x2   :  { %1784 = vmatpush.xpose.msk.msra.mxu0 %vm56_vm0, %v2124_v0  ;;  %v2141_v3 = vld [vmem:[%s3327_s1 + $0x30] sm:$0xff]  ;;  %v2146_v4 = vld [vmem:[%s3327_s1] sm:$0xff]  ;;  %v63_v5 = vsel %vm56_vm0, %v2136_v2, 0.0  ;;  %v69_v6 = vsel %vm56_vm0, %v2131_v1, 0.0 }
   0x3   :  { %v57_v7 = vsel %vm56_vm0, %v2146_v4, 0.0  ;;  %64 = vadd.xlane.f32.xlu1 %v63_v5  ;;  %70 = vadd.xlane.f32.xlu2 %v69_v6 }
   0x4   :  { %58 = vadd.xlane.f32.xlu0 %v57_v7 }
   0x5   :  { %19 = vsyncpa [#allocation5], 0  ;;  %v2159_v8 = vld [vmem:[%s3327_s1 + $0x28] sm:$0xff]  ;;  %v2164_v9 = vld [vmem:[%s3327_s1 + $0x18] sm:$0xff]  ;;  %v78_v14 = vsel %vm56_vm0, %v2124_v0, 0.0  ;;  %v75_v15 = vsel %vm56_vm0, %v2141_v3, 0.0 }
   0x6   :  { %1785 = vmatpush.xpose.msk.msra.mxu0 %vm56_vm0, %v2141_v3  ;;  %v2169_v10 = vld [vmem:[%s3327_s1 + $0x8] sm:$0xff]  ;;  %v66_v11 = vsel %vm56_vm0, %v2164_v9, 0.0  ;;  %v72_v12 = vsel %vm56_vm0, %v2159_v8, 0.0  ;;  %v2049_v16 = vmov 1.0   ;;  %v1891_v17 = vld [vmem:[%s3328_s2] ss:$0 sm:$0xff] }
   0x7   :  { %v60_v13 = vsel %vm56_vm0, %v2169_v10, 0.0  ;;  %v47_v18 = vld [vmem:[%s3326_s0 + $0x38] sm:$0xff]  ;;  %v46_v20 = vld [vmem:[%s3326_s0 + $0x30] sm:$0xff]  ;;  %v45_v23 = vld [vmem:[%s3326_s0 + $0x28] sm:$0xff]  ;;  %s1752_s16 = sshll.u32 %s3337_s11, 4  ;;  %s2053_s18 = smov 128   ;;  %s1753_s16 = int_to_ptr.hbm [resolvable:$true] %s1752_s16 }
   0x8   :  { %v264_v19 = vmul.f32 %v1891_v17, %v47_v18  ;;  %v263_v21 = vmul.f32 %v1891_v17, %v46_v20  ;;  %v44_v24 = vld [vmem:[%s3326_s0 + $0x20] sm:$0xff]  ;;  %v43_v25 = vld [vmem:[%s3326_s0 + $0x18] sm:$0xff]  ;;  %v262_v26 = vmul.f32 %v1891_v17, %v45_v23  ;;  %v42_v28 = vld [vmem:[%s3326_s0 + $0x10] sm:$0xff]  ;;  %s2054_s19 = smov 8   ;;  %s1765_s22 = sshll.u32 %s3338_s12, 4  ;;  %s1766_s22 = int_to_ptr.hbm [resolvable:$true] %s1765_s22 }
   0x9   :  { %v261_v27 = vmul.f32 %v1891_v17, %v44_v24  ;;  %v260_v29 = vmul.f32 %v1891_v17, %v43_v25  ;;  %v41_v30 = vld [vmem:[%s3326_s0 + $0x8] sm:$0xff]  ;;  %v259_v31 = vmul.f32 %v1891_v17, %v42_v28  ;;  %v40_v32 = vld [vmem:[%s3326_s0] sm:$0xff] }
   0xa   :  { %1786 = vmatpush.xpose.msk.msra.mxu0 %vm56_vm0, %v2159_v8  ;;  %297 = vmatpush.msra.mxu1 %v264_v19  ;;  %v258_v33 = vmul.f32 %v1891_v17, %v41_v30  ;;  %v257_v36 = vmul.f32 %v1891_v17, %v40_v32 }
   0xb   :  { %67 = vadd.xlane.f32.xlu1 %v66_v11  ;;  %73 = vadd.xlane.f32.xlu2 %v72_v12 }
   0xc   :  { %61 = vadd.xlane.f32.xlu0 %v60_v13  ;;  %298 = vmatpush.msra.mxu1 %v263_v21 }
   0xe   :  { %1787 = vmatpush.xpose.msk.msra.mxu0 %vm56_vm0, %v2131_v1  ;;  %299 = vmatpush.msra.mxu1 %v262_v26 }
  0x10   :  { %300 = vmatpush.msra.mxu1 %v261_v27 }
  0x12   :  { %1788 = vmatpush.xpose.msk.msra.mxu0 %vm56_vm0, %v2164_v9  ;;  %301 = vmatpush.msra.mxu1 %v260_v29 }
  0x13   :  { %79 = vadd.xlane.f32.xlu1 %v78_v14 }
  0x14   :  { %76 = vadd.xlane.f32.xlu0 %v75_v15  ;;  %302 = vmatpush.msra.mxu1 %v259_v31 }
  0x16   :  { %1789 = vmatpush.xpose.msk.msra.mxu0 %vm56_vm0, %v2136_v2  ;;  %303 = vmatpush.msra.mxu1 %v258_v33 }
  0x18   :  { %304 = vmatpush.msra.mxu1 %v257_v36 }
  0x1a   :  { %1790 = vmatpush.xpose.msk.msra.mxu0 %vm56_vm0, %v2169_v10 }
  0x1e   :  { %1791 = vmatpush.xpose.msk.msra.mxu0 %vm56_vm0, %v2146_v4 }
  0x21   :  { %1792 = vmatmul.msk.f32.vlgmr.msra.gmra.mxu0 %vm56_vm0, %v2049_v16 }
  0x76   :  { %v2229_v38 = vpop.xlane.xlu1 %64  ;;  %v2241_v53 = vpop.xlane.xlu2 %70 }
  0x77   :  { %v2204_v22 = vpop.xlane.xlu0 %58  ;;  %vm162_vm12 = vweird.f32 %v2229_v38 }
  0x78   :  { %1895 = vrsqrt.f32 %v2204_v22  ;;  %vm142_vm1 = vweird.f32 %v2204_v22  ;;  %vm128_vm4 = vcmp.gt.f32.partialorder %v2204_v22, 0.0 }
  0x7e   :  { %v1896_v35 = vpop.eup %1895  ;;  %v2235_v47 = vpop.xlane.xlu1 %67 }
  0x7f   :  { %v2225_v34 = vpop.xlane.xlu0 %61  ;;  %v137_v37 = vmul.f32 %v1896_v35, %v2204_v22  ;;  %vm143_vm2 = vweird.f32 %v1896_v35  ;;  %v2262_v17 = vpop.xlane.xlu2 %73 }
  0x80   :  { %1897 = vrsqrt.f32 %v2225_v34  ;;  %vm2243_vm3 = vmor %vm142_vm1, %vm143_vm2  ;;  %vm152_vm6 = vweird.f32 %v2225_v34  ;;  %vm129_vm14 = vcmp.gt.f32.partialorder %v2225_v34, 0.0  ;;  %vm130_vm1 = vcmp.gt.f32.partialorder %v2229_v38, 0.0 }
  0x81   :  { %v138_v39 = vmul.f32 %v1896_v35, %v137_v37  ;;  %1899 = vrsqrt.f32 %v2229_v38  ;;  %vm172_vm2 = vweird.f32 %v2235_v47 }
  0x83   :  { %v139_v42 = vmul.f32 0.5, %v138_v39 }
  0x85   :  { %v140_v45 = vsub.f32 1.5, %v139_v42 }
  0x86   :  { %v1898_v40 = vpop.eup %1897 }
  0x87   :  { %v147_v43 = vmul.f32 %v1898_v40, %v2225_v34  ;;  %v2233_v44 = vpop.eup %1899  ;;  %v141_v51 = vmul.f32 %v1896_v35, %v140_v45  ;;  %vm153_vm7 = vweird.f32 %v1898_v40  ;;  %v2282_v29 = vpop.xlane.xlu0 %76 }
  0x88   :  { %v157_v49 = vmul.f32 %v2233_v44, %v2229_v38  ;;  %vm2257_vm11 = vmor %vm152_vm6, %vm153_vm7  ;;  %vm163_vm13 = vweird.f32 %v2233_v44  ;;  %vm182_vm6 = vweird.f32 %v2241_v53 }
  0x89   :  { %v148_v46 = vmul.f32 %v1898_v40, %v147_v43  ;;  %v145_v59 = vsel %vm2243_vm3, %v1896_v35, %v141_v51  ;;  %vm164_vm15 = vmor %vm162_vm12, %vm163_vm13  ;;  %vm133_vm13 = vcmp.gt.f32.partialorder %v2262_v17, 0.0 }
  0x8a   :  { %v158_v56 = vmul.f32 %v2233_v44, %v157_v49  ;;  %v216_v6 = vsel %vm128_vm4, %v145_v59, 0.0 }
  0x8b   :  { %v149_v52 = vmul.f32 0.5, %v148_v46  ;;  %v236_v19 = vmul.f32 %v216_v6, %v2146_v4 }
  0x8c   :  { %v159_v62 = vmul.f32 0.5, %v158_v56 }
  0x8d   :  { %v150_v60 = vsub.f32 1.5, %v149_v52 }
  0x8e   :  { %v160_v14 = vsub.f32 1.5, %v159_v62 }
  0x8f   :  { %v151_v7 = vmul.f32 %v1898_v40, %v150_v60 }
  0x90   :  { %v161_v23 = vmul.f32 %v2233_v44, %v160_v14 }
  0x91   :  { %v155_v21 = vsel %vm2257_vm11, %v1898_v40, %v151_v7  ;;  %v80_v40 = vpop.xlane.xlu1 %79 }
  0x92   :  { %v217_v25 = vsel %vm129_vm14, %v155_v21, 0.0  ;;  %v165_v26 = vsel %vm164_vm15, %v2233_v44, %v161_v23  ;;  %vm202_vm14 = vweird.f32 %v2282_v29 }
  0x93   :  { %v237_v30 = vmul.f32 %v217_v25, %v2169_v10  ;;  %v218_v33 = vsel %vm130_vm1, %v165_v26, 0.0 }
  0x94   :  { %v238_v10 = vmul.f32 %v218_v33, %v2136_v2 }
  0x9e   :  { %v125_v41 = vpop.f32.mrf.mxu0 }
  0x9f   :  { %1901 = vrsqrt.f32 %v125_v41  ;;  %vm231_vm8 = vweird.f32 %v125_v41  ;;  %vm224_vm10 = vcmp.gt.f32.partialorder %v125_v41, 0.0 }
  0xa0   :  { %1903 = vrsqrt.f32 %v2235_v47 }
  0xa1   :  { %1905 = vrsqrt.f32 %v2241_v53 }
  0xa2   :  { %1907 = vrsqrt.f32 %v2262_v17 }
  0xa3   :  { %1909 = vrsqrt.f32 %v2282_v29 }
  0xa4   :  { %1911 = vrsqrt.f32 %v80_v40 }
  0xa5   :  { %v1902_v48 = vpop.eup %1901 }
  0xa6   :  { %v226_v50 = vmul.f32 %v1902_v48, %v125_v41  ;;  %v2248_v58 = vpop.eup %1903  ;;  %vm232_vm5 = vweird.f32 %v1902_v48 }
  0xa7   :  { %v167_v63 = vmul.f32 %v2248_v58, %v2235_v47  ;;  %vm233_vm9 = vmor %vm231_vm8, %vm232_vm5  ;;  %v1906_v20 = vpop.eup %1905  ;;  %vm173_vm3 = vweird.f32 %v2248_v58  ;;  %vm131_vm5 = vcmp.gt.f32.partialorder %v2235_v47, 0.0 }
  0xa8   :  { %v227_v54 = vmul.f32 %v1902_v48, %v226_v50  ;;  %v177_v24 = vmul.f32 %v1906_v20, %v2241_v53  ;;  %v1908_v31 = vpop.eup %1907  ;;  %vm174_vm4 = vmor %vm172_vm2, %vm173_vm3  ;;  %vm183_vm7 = vweird.f32 %v1906_v20  ;;  %vm134_vm2 = vcmp.gt.f32.partialorder %v2282_v29, 0.0 }
  0xa9   :  { %v168_v15 = vmul.f32 %v2248_v58, %v167_v63  ;;  %v187_v36 = vmul.f32 %v1908_v31, %v2262_v17  ;;  %v1910_v41 = vpop.eup %1909  ;;  %vm184_vm8 = vmor %vm182_vm6, %vm183_vm7  ;;  %vm193_vm11 = vweird.f32 %v1908_v31  ;;  %vm212_vm3 = vweird.f32 %v80_v40 }
  0xaa   :  { %v228_v57 = vmul.f32 0.5, %v227_v54  ;;  %v178_v27 = vmul.f32 %v1906_v20, %v177_v24  ;;  %v197_v2 = vmul.f32 %v1910_v41, %v2282_v29  ;;  %v1912_v50 = vpop.eup %1911  ;;  %vm203_vm15 = vweird.f32 %v1910_v41 }
  0xab   :  { %v169_v4 = vmul.f32 0.5, %v168_v15  ;;  %v188_v39 = vmul.f32 %v1908_v31, %v187_v36  ;;  %v207_v55 = vmul.f32 %v1912_v50, %v80_v40  ;;  %vm204_vm1 = vmor %vm202_vm14, %vm203_vm15  ;;  %vm135_vm6 = vcmp.gt.f32.partialorder %v80_v40, 0.0 }
  0xac   :  { %v229_v61 = vsub.f32 1.5, %v228_v57  ;;  %v179_v34 = vmul.f32 0.5, %v178_v27  ;;  %v198_v49 = vmul.f32 %v1910_v41, %v197_v2  ;;  %vm399_vm7 = vcmask 261120  }
  0xad   :  { %v170_v28 = vsub.f32 1.5, %v169_v4  ;;  %v189_v45 = vmul.f32 0.5, %v188_v39  ;;  %v208_v57 = vmul.f32 %v1912_v50, %v207_v55 }
  0xae   :  { %v230_v5 = vmul.f32 %v1902_v48, %v229_v61  ;;  %v180_v37 = vsub.f32 1.5, %v179_v34  ;;  %v199_v56 = vmul.f32 0.5, %v198_v49 }
  0xaf   :  { %v171_v35 = vmul.f32 %v2248_v58, %v170_v28  ;;  %v209_v61 = vmul.f32 0.5, %v208_v57  ;;  %v1892_v28 = vld [vmem:[%s3329_s3] ss:$0 sm:$0xff]  ;;  %s2055_s3 = smov [#allocation4]  }
  0xb0   :  { %v234_v11 = vsel %vm233_vm9, %v1902_v48, %v230_v5  ;;  %v181_v44 = vmul.f32 %v1906_v20, %v180_v37  ;;  %vm132_vm9 = vcmp.gt.f32.partialorder %v2241_v53, 0.0  ;;  %v190_v48 = vsub.f32 1.5, %v189_v45  ;;  %s1763_s20 = sshll.u32 %s2055_s3, 4  ;;  %s1764_s20 = int_to_ptr.vmem [resolvable:$true] %s1763_s20 }
  0xb1   :  { %v235_v13 = vsel %vm224_vm10, %v234_v11, 0.0  ;;  %v175_v38 = vsel %vm174_vm4, %v2248_v58, %v171_v35  ;;  %vm192_vm10 = vweird.f32 %v2262_v17  ;;  %v200_v58 = vsub.f32 1.5, %v199_v56 }
  0xb2   :  { %v2264_v18 = vperm.slane %v235_v13, 0  ;;  %v219_v43 = vsel %vm131_vm5, %v175_v38, 0.0  ;;  %v185_v47 = vsel %vm184_vm8, %v1906_v20, %v181_v44  ;;  %v191_v54 = vmul.f32 %v1908_v31, %v190_v48  ;;  %vm194_vm12 = vmor %vm192_vm10, %vm193_vm11 }
  0xb3   :  { %v239_v46 = vmul.f32 %v219_v43, %v2164_v9  ;;  %v220_v52 = vsel %vm132_vm9, %v185_v47, 0.0  ;;  %v201_v62 = vmul.f32 %v1910_v41, %v200_v58  ;;  %v210_v63 = vsub.f32 1.5, %v209_v61 }
  0xb4   :  { %v2273_v22 = vmul.f32 %v2264_v18, %v236_v19  ;;  %v2288_v32 = vmul.f32 %v2264_v18, %v237_v30  ;;  %v2300_v42 = vmul.f32 %v2264_v18, %v238_v10  ;;  %v240_v9 = vmul.f32 %v220_v52, %v2131_v1 }
  0xb5   :  { %v2309_v51 = vmul.f32 %v2264_v18, %v239_v46  ;;  %v195_v53 = vsel %vm194_vm12, %v1908_v31, %v191_v54  ;;  %v205_v5 = vsel %vm204_vm1, %v1910_v41, %v201_v62  ;;  %vm213_vm4 = vweird.f32 %v1912_v50 }
  0xb6   :  { %1793 = vmatmul.msk.f32.vlgmr.msra.gmra.mxu1 %vm56_vm0, %v2273_v22  ;;  %v2317_v59 = vmul.f32 %v2264_v18, %v240_v9  ;;  %v221_v60 = vsel %vm133_vm13, %v195_v53, 0.0  ;;  %v222_v7 = vsel %vm134_vm2, %v205_v5, 0.0  ;;  %v211_v11 = vmul.f32 %v1912_v50, %v210_v63  ;;  %vm214_vm5 = vmor %vm212_vm3, %vm213_vm4 }
  0xb7   :  { %v241_v1 = vmul.f32 %v221_v60, %v2159_v8  ;;  %v242_v12 = vmul.f32 %v222_v7, %v2141_v3 }
  0xb8   :  { %v215_v13 = vsel %vm214_vm5, %v1912_v50, %v211_v11 }
  0xb9   :  { %v250_v6 = vmul.f32 %v2264_v18, %v241_v1  ;;  %v251_v14 = vmul.f32 %v2264_v18, %v242_v12  ;;  %v223_v8 = vsel %vm135_vm6, %v215_v13, 0.0 }
  0xba   :  { %v243_v15 = vmul.f32 %v223_v8, %v2124_v0 }
  0xbc   :  { %v252_v17 = vmul.f32 %v2264_v18, %v243_v15 }
  0xbe   :  { %1794 = vmatmul.msk.f32.gmra.mxu1 %vm56_vm0, %v2288_v32 }
  0xc6   :  { %1795 = vmatmul.msk.f32.gmra.mxu1 %vm56_vm0, %v2300_v42 }
  0xce   :  { %1796 = vmatmul.msk.f32.gmra.mxu1 %vm56_vm0, %v2309_v51 }
  0xd6   :  { %1797 = vmatmul.msk.f32.gmra.mxu1 %vm56_vm0, %v2317_v59 }
  0xde   :  { %1798 = vmatmul.msk.f32.gmra.mxu1 %vm56_vm0, %v250_v6 }
  0xe6   :  { %1799 = vmatmul.msk.f32.gmra.mxu1 %vm56_vm0, %v251_v14 }
  0xee   :  { %1800 = vmatmul.msk.f32.gmra.mxu1 %vm56_vm0, %v252_v17 }
 0x133   :  { %v306_v19 = vpop.f32.mrf.mxu1 }
 0x134   :  { %v330_v37 = vmax.f32 %v306_v19, 0.0 }
 0x136   :  { %v342_v40 = vmul.f32 %v1892_v28, %v330_v37 }
 0x13b   :  { %v309_v20 = vpop.f32.mrf.mxu1 }
 0x13c   :  { %v331_v36 = vmax.f32 %v309_v20, 0.0 }
 0x13e   :  { %v343_v39 = vmul.f32 %v1892_v28, %v331_v36 }
 0x143   :  { %v312_v21 = vpop.f32.mrf.mxu1 }
 0x144   :  { %v332_v34 = vmax.f32 %v312_v21, 0.0 }
 0x146   :  { %v344_v38 = vmul.f32 %v1892_v28, %v332_v34 }
 0x14b   :  { %v315_v23 = vpop.f32.mrf.mxu1 }
 0x14c   :  { %v333_v31 = vmax.f32 %v315_v23, 0.0 }
 0x14e   :  { %v345_v10 = vmul.f32 %v1892_v28, %v333_v31 }
 0x153   :  { %v318_v24 = vpop.f32.mrf.mxu1 }
 0x154   :  { %v334_v30 = vmax.f32 %v318_v24, 0.0 }
 0x156   :  { %v346_v35 = vmul.f32 %v1892_v28, %v334_v30 }
 0x15b   :  { %v321_v4 = vpop.f32.mrf.mxu1 }
 0x15c   :  { %v335_v29 = vmax.f32 %v321_v4, 0.0 }
 0x15e   :  { %v347_v33 = vmul.f32 %v1892_v28, %v335_v29 }
 0x163   :  { %v324_v3 = vpop.f32.mrf.mxu1 }
 0x164   :  { %v336_v26 = vmax.f32 %v324_v3, 0.0 }
 0x166   :  { %v348_v18 = vmul.f32 %v1892_v28, %v336_v26 }
 0x16b   :  { %v327_v25 = vpop.f32.mrf.mxu1 }
 0x16c   :  { %v337_v27 = vmax.f32 %v327_v25, 0.0 }
 0x16e   :  { %v349_v0 = vmul.f32 %v1892_v28, %v337_v27 }
 0x170   :  { %358 = vmatpush.msra.mxu2 %v349_v0 }
 0x172   :  { %359 = vmatpush.msra.mxu2 %v348_v18 }
 0x174   :  { %360 = vmatpush.msra.mxu2 %v347_v33 }
 0x176   :  { %361 = vmatpush.msra.mxu2 %v346_v35 }
 0x178   :  { %362 = vmatpush.msra.mxu2 %v345_v10 }
 0x17a   :  { %363 = vmatpush.msra.mxu2 %v344_v38 }
 0x17c   :  { %364 = vmatpush.msra.mxu2 %v343_v39 }
 0x17e   :  { %365 = vmatpush.msra.mxu2 %v342_v40 }
 0x17f   :  { %1801 = vmatmul.msk.f32.vlgmr.msra.gmra.mxu2 %vm56_vm0, %v2273_v22 }
 0x187   :  { %1802 = vmatmul.msk.f32.gmra.mxu2 %vm56_vm0, %v2288_v32 }
 0x18f   :  { %1803 = vmatmul.msk.f32.gmra.mxu2 %vm56_vm0, %v2300_v42 }
 0x197   :  { %1804 = vmatmul.msk.f32.gmra.mxu2 %vm56_vm0, %v2309_v51 }
 0x19f   :  { %1805 = vmatmul.msk.f32.gmra.mxu2 %vm56_vm0, %v2317_v59 }
 0x1a7   :  { %1806 = vmatmul.msk.f32.gmra.mxu2 %vm56_vm0, %v250_v6 }
 0x1af   :  { %1807 = vmatmul.msk.f32.gmra.mxu2 %vm56_vm0, %v251_v14 }
 0x1b7   :  { %1808 = vmatmul.msk.f32.gmra.mxu2 %vm56_vm0, %v252_v17 }
 0x202   :  { %v2347_v41 = vpop.f32.mrf.mxu2 }
 0x203   :  { %v391_v9 = vmul.f32 %v2347_v41, %v2347_v41 }
 0x205   :  { %v400_v57 = vsel %vm399_vm7, %v391_v9, 0.0 }
 0x20a   :  { %v2349_v22 = vpop.f32.mrf.mxu2 }
 0x20b   :  { %v392_v59 = vmul.f32 %v2349_v22, %v2349_v22 }
 0x20d   :  { %v403_v60 = vsel %vm399_vm7, %v392_v59, 0.0 }
 0x212   :  { %v2351_v32 = vpop.f32.mrf.mxu2 }
 0x213   :  { %v393_v46 = vmul.f32 %v2351_v32, %v2351_v32 }
 0x215   :  { %v406_v49 = vsel %vm399_vm7, %v393_v46, 0.0 }
 0x21a   :  { %v2353_v43 = vpop.f32.mrf.mxu2 }
 0x21b   :  { %v394_v51 = vmul.f32 %v2353_v43, %v2353_v43 }
 0x21d   :  { %v409_v55 = vsel %vm399_vm7, %v394_v51, 0.0 }
 0x222   :  { %v2355_v42 = vpop.f32.mrf.mxu2 }
 0x223   :  { %v395_v53 = vmul.f32 %v2355_v42, %v2355_v42 }
 0x225   :  { %v412_v58 = vsel %vm399_vm7, %v395_v53, 0.0 }
 0x22a   :  { %v2357_v44 = vpop.f32.mrf.mxu2 }
 0x22b   :  { %v396_v45 = vmul.f32 %v2357_v44, %v2357_v44 }
 0x22d   :  { %v415_v2 = vsel %vm399_vm7, %v396_v45, 0.0 }
 0x22e   :  { %416 = vadd.xlane.f32.xlu1 %v415_v2 }
 0x232   :  { %v2364_v47 = vpop.f32.mrf.mxu2 }
 0x233   :  { %v397_v48 = vmul.f32 %v2364_v47, %v2364_v47 }
 0x235   :  { %v418_v50 = vsel %vm399_vm7, %v397_v48, 0.0 }
 0x236   :  { %407 = vadd.xlane.f32.xlu1 %v406_v49  ;;  %419 = vadd.xlane.f32.xlu0 %v418_v50 }
 0x23a   :  { %v2372_v52 = vpop.f32.mrf.mxu2 }
 0x23b   :  { %v398_v54 = vmul.f32 %v2372_v52, %v2372_v52 }
 0x23d   :  { %v421_v56 = vsel %vm399_vm7, %v398_v54, 0.0 }
 0x23e   :  { %410 = vadd.xlane.f32.xlu0 %v409_v55  ;;  %422 = vadd.xlane.f32.xlu2 %v421_v56 }
 0x246   :  { %401 = vadd.xlane.f32.xlu0 %v400_v57  ;;  %413 = vadd.xlane.f32.xlu2 %v412_v58 }
 0x24e   :  { %404 = vadd.xlane.f32.xlu2 %v403_v60 }
 0x2a1   :  { %v417_v61 = vpop.xlane.xlu1 %416 }
 0x2a2   :  { %v2387_v1 = vmax.f32 %v417_v61, 1e-24 }
 0x2a4   :  { %vm488_vm15 = vweird.f32 %v2387_v1 }
 0x2a9   :  { %v420_v62 = vpop.xlane.xlu0 %419  ;;  %v408_v14 = vpop.xlane.xlu1 %407 }
 0x2aa   :  { %v430_v63 = vmax.f32 %v420_v62, 1e-24  ;;  %v2399_v17 = vmax.f32 %v408_v14, 1e-24 }
 0x2ac   :  { %1913 = vrsqrt.f32 %v430_v63  ;;  %vm498_vm13 = vweird.f32 %v430_v63 }
 0x2ad   :  { %1915 = vrsqrt.f32 %v2387_v1 }
 0x2b1   :  { %v411_v5 = vpop.xlane.xlu0 %410  ;;  %v423_v6 = vpop.xlane.xlu2 %422 }
 0x2b2   :  { %v431_v7 = vmax.f32 %v423_v6, 1e-24  ;;  %v2390_v11 = vpop.eup %1913  ;;  %v2392_v12 = vmax.f32 %v411_v5, 1e-24 }
 0x2b3   :  { %v2394_v13 = vpop.eup %1915  ;;  %v493_v8 = vmul.f32 %v2390_v11, %v430_v63  ;;  %vm499_vm9 = vweird.f32 %v2390_v11 }
 0x2b4   :  { %1917 = vrsqrt.f32 %v431_v7  ;;  %v483_v15 = vmul.f32 %v2394_v13, %v2387_v1  ;;  %vm508_vm10 = vweird.f32 %v431_v7  ;;  %vm489_vm12 = vweird.f32 %v2394_v13  ;;  %vm500_vm14 = vmor %vm498_vm13, %vm499_vm9 }
 0x2b5   :  { %1919 = vrsqrt.f32 %v2392_v12  ;;  %v494_v19 = vmul.f32 %v2390_v11, %v493_v8  ;;  %vm2434_vm1 = vmor %vm488_vm15, %vm489_vm12  ;;  %vm468_vm6 = vweird.f32 %v2392_v12 }
 0x2b6   :  { %v484_v24 = vmul.f32 %v2394_v13, %v483_v15  ;;  %1921 = vrsqrt.f32 %v2399_v17 }
 0x2b7   :  { %v495_v26 = vmul.f32 0.5, %v494_v19 }
 0x2b8   :  { %v485_v28 = vmul.f32 0.5, %v484_v24 }
 0x2b9   :  { %v414_v20 = vpop.xlane.xlu2 %413  ;;  %v402_v3 = vpop.xlane.xlu0 %401  ;;  %v496_v31 = vsub.f32 1.5, %v495_v26 }
 0x2ba   :  { %v428_v21 = vmax.f32 %v414_v20, 1e-24  ;;  %v1918_v23 = vpop.eup %1917  ;;  %v2407_v29 = vmax.f32 %v402_v3, 1e-24  ;;  %v486_v10 = vsub.f32 1.5, %v485_v28 }
 0x2bb   :  { %v503_v4 = vmul.f32 %v1918_v23, %v431_v7  ;;  %v2405_v25 = vpop.eup %1919  ;;  %vm509_vm8 = vweird.f32 %v1918_v23  ;;  %v497_v45 = vmul.f32 %v2390_v11, %v496_v31 }
 0x2bc   :  { %1923 = vrsqrt.f32 %v428_v21  ;;  %v463_v0 = vmul.f32 %v2405_v25, %v2392_v12  ;;  %v2411_v18 = vpop.eup %1921  ;;  %vm510_vm11 = vmor %vm508_vm10, %vm509_vm8  ;;  %v487_v48 = vmul.f32 %v2394_v13, %v486_v10  ;;  %vm478_vm3 = vweird.f32 %v428_v21 }
 0x2bd   :  { %v504_v27 = vmul.f32 %v1918_v23, %v503_v4  ;;  %1925 = vrsqrt.f32 %v2407_v29  ;;  %v453_v37 = vmul.f32 %v2411_v18, %v2399_v17  ;;  %v501_v56 = vsel %vm500_vm14, %v2390_v11, %v497_v45 }
 0x2be   :  { %v464_v38 = vmul.f32 %v2405_v25, %v463_v0  ;;  %v518_v60 = vmul.f32 %v501_v56, %v2364_v47  ;;  %v491_v61 = vsel %vm2434_vm1, %v2394_v13, %v487_v48  ;;  %vm469_vm4 = vweird.f32 %v2405_v25 }
 0x2bf   :  { %v505_v30 = vmul.f32 0.5, %v504_v27  ;;  %v454_v49 = vmul.f32 %v2411_v18, %v453_v37  ;;  %v517_v6 = vmul.f32 %v491_v61, %v2357_v44  ;;  %vm459_vm8 = vweird.f32 %v2411_v18  ;;  %vm470_vm9 = vmor %vm468_vm6, %vm469_vm4 }
 0x2c0   :  { %v465_v50 = vmul.f32 0.5, %v464_v38  ;;  %vm458_vm10 = vweird.f32 %v2399_v17  ;;  %vm438_vm1 = vweird.f32 %v2407_v29  ;;  %v585_v10 = vlaneseq }
 0x2c1   :  { %v405_v33 = vpop.xlane.xlu2 %404  ;;  %v506_v34 = vsub.f32 1.5, %v505_v30 }
 0x2c2   :  { %v2413_v35 = vmax.f32 %v405_v33, 1e-24  ;;  %v1924_v36 = vpop.eup %1923  ;;  %v466_v59 = vsub.f32 1.5, %v465_v50  ;;  %v586_v37 = vand.u32 127, %v585_v10 }
 0x2c3   :  { %v473_v39 = vmul.f32 %v1924_v36, %v428_v21  ;;  %v507_v40 = vmul.f32 %v1918_v23, %v506_v34  ;;  %v1926_v55 = vpop.eup %1925  ;;  %vm479_vm2 = vweird.f32 %v1924_v36 }
 0x2c4   :  { %1927 = vrsqrt.f32 %v2413_v35  ;;  %v433_v62 = vmul.f32 %v1926_v55, %v2407_v29  ;;  %vm480_vm5 = vmor %vm478_vm3, %vm479_vm2  ;;  %v467_v14 = vmul.f32 %v2405_v25, %v466_v59  ;;  %vm448_vm13 = vweird.f32 %v2413_v35 }
 0x2c5   :  { %v474_v2 = vmul.f32 %v1924_v36, %v473_v39  ;;  %v511_v46 = vsel %vm510_vm11, %v1918_v23, %v507_v40  ;;  %vm460_vm11 = vmor %vm458_vm10, %vm459_vm8  ;;  %vm439_vm15 = vweird.f32 %v1926_v55  ;;  %v2508_v38 = vcvt.s32.f32 %v586_v37 }
 0x2c6   :  { %v2426_v54 = vmul.f32 %v511_v46, %v2372_v52  ;;  %v455_v52 = vmul.f32 0.5, %v454_v49  ;;  %v434_v7 = vmul.f32 %v1926_v55, %v433_v62  ;;  %v471_v19 = vsel %vm470_vm9, %v2405_v25, %v467_v14  ;;  %vm440_vm2 = vmor %vm438_vm1, %vm439_vm15 }
 0x2c7   :  { %v475_v51 = vmul.f32 0.5, %v474_v2  ;;  %v515_v20 = vmul.f32 %v471_v19, %v2353_v43 }
 0x2c8   :  { %1809 = vmatpush.xpose.msk.msra.mxu3 %vm399_vm7, %v2426_v54  ;;  %v456_v5 = vsub.f32 1.5, %v455_v52  ;;  %v435_v8 = vmul.f32 0.5, %v434_v7 }
 0x2c9   :  { %v476_v53 = vsub.f32 1.5, %v475_v51 }
 0x2ca   :  { %v1928_v9 = vpop.eup %1927  ;;  %v457_v44 = vmul.f32 %v2411_v18, %v456_v5  ;;  %v436_v21 = vsub.f32 1.5, %v435_v8 }
 0x2cb   :  { %v443_v58 = vmul.f32 %v1928_v9, %v2413_v35  ;;  %v477_v63 = vmul.f32 %v1924_v36, %v476_v53  ;;  %vm449_vm12 = vweird.f32 %v1928_v9 }
 0x2cc   :  { %1810 = vmatpush.xpose.msk.msra.mxu3 %vm399_vm7, %v518_v60  ;;  %v461_v12 = vsel %vm460_vm11, %v2411_v18, %v457_v44  ;;  %vm450_vm14 = vmor %vm448_vm13, %vm449_vm12  ;;  %v437_v4 = vmul.f32 %v1926_v55, %v436_v21 }
 0x2cd   :  { %v444_v1 = vmul.f32 %v1928_v9, %v443_v58  ;;  %v481_v11 = vsel %vm480_vm5, %v1924_v36, %v477_v63 }
 0x2ce   :  { %v516_v13 = vmul.f32 %v481_v11, %v2355_v42  ;;  %v514_v42 = vmul.f32 %v461_v12, %v2351_v32  ;;  %v441_v17 = vsel %vm440_vm2, %v1926_v55, %v437_v4 }
 0x2cf   :  { %v445_v47 = vmul.f32 0.5, %v444_v1  ;;  %v512_v3 = vmul.f32 %v441_v17, %v2347_v41 }
 0x2d0   :  { %1811 = vmatpush.xpose.msk.msra.mxu3 %vm399_vm7, %v517_v6 }
 0x2d1   :  { %v446_v15 = vsub.f32 1.5, %v445_v47 }
 0x2d3   :  { %v447_v23 = vmul.f32 %v1928_v9, %v446_v15 }
 0x2d4   :  { %1812 = vmatpush.xpose.msk.msra.mxu3 %vm399_vm7, %v516_v13 }
 0x2d5   :  { %v451_v24 = vsel %vm450_vm14, %v1928_v9, %v447_v23 }
 0x2d6   :  { %v513_v43 = vmul.f32 %v451_v24, %v2349_v22 }
 0x2d8   :  { %1813 = vmatpush.xpose.msk.msra.mxu3 %vm399_vm7, %v515_v20 }
 0x2dc   :  { %1814 = vmatpush.xpose.msk.msra.mxu3 %vm399_vm7, %v514_v42 }
 0x2e0   :  { %1815 = vmatpush.xpose.msk.msra.mxu3 %vm399_vm7, %v513_v43 }
 0x2e4   :  { %1816 = vmatpush.xpose.msk.msra.mxu3 %vm399_vm7, %v512_v3 }
 0x2e7   :  { %1817 = vmatmul.msk.f32.vlgmr.msra.gmra.mxu3 %vm399_vm7, %v512_v3 }
 0x2ef   :  { %1818 = vmatmul.msk.f32.gmra.mxu3 %vm399_vm7, %v513_v43 }
 0x2f7   :  { %1819 = vmatmul.msk.f32.gmra.mxu3 %vm399_vm7, %v514_v42 }
 0x2ff   :  { %1820 = vmatmul.msk.f32.gmra.mxu3 %vm399_vm7, %v515_v20 }
 0x307   :  { %1821 = vmatmul.msk.f32.gmra.mxu3 %vm399_vm7, %v516_v13 }
 0x30f   :  { %1822 = vmatmul.msk.f32.gmra.mxu3 %vm399_vm7, %v517_v6 }
 0x317   :  { %1823 = vmatmul.msk.f32.gmra.mxu3 %vm399_vm7, %v518_v60 }
 0x31f   :  { %1824 = vmatmul.msk.f32.gmra.mxu3 %vm399_vm7, %v2426_v54 }
 0x36a   :  { %v2476_v41 = vpop.f32.mrf.mxu3 }
 0x36b   :  { %v588_v22 = vsel %vm56_vm0, %v2476_v41, -inf }
 0x36c   :  { %589 = vmax.xlane.f32.xlu1 %v588_v22 }
 0x372   :  { %v2480_v32 = vpop.f32.mrf.mxu3 }
 0x373   :  { %v591_v25 = vsel %vm56_vm0, %v2480_v32, -inf }
 0x374   :  { %592 = vmax.xlane.f32.xlu2 %v591_v25 }
 0x37a   :  { %v2484_v26 = vpop.f32.mrf.mxu3 }
 0x37b   :  { %v594_v27 = vsel %vm56_vm0, %v2484_v26, -inf }
 0x37c   :  { %595 = vmax.xlane.f32.xlu0 %v594_v27 }
 0x382   :  { %v2488_v28 = vpop.f32.mrf.mxu3 }
 0x383   :  { %v597_v29 = vsel %vm56_vm0, %v2488_v28, -inf }
 0x384   :  { %598 = vmax.xlane.f32.xlu1 %v597_v29 }
 0x38a   :  { %v2492_v0 = vpop.f32.mrf.mxu3 }
 0x38b   :  { %v600_v30 = vsel %vm56_vm0, %v2492_v0, -inf }
 0x38c   :  { %601 = vmax.xlane.f32.xlu2 %v600_v30 }
 0x392   :  { %v2496_v18 = vpop.f32.mrf.mxu3 }
 0x393   :  { %v603_v31 = vsel %vm56_vm0, %v2496_v18, -inf }
 0x394   :  { %604 = vmax.xlane.f32.xlu0 %v603_v31 }
 0x39a   :  { %v2500_v33 = vpop.f32.mrf.mxu3 }
 0x39b   :  { %v606_v34 = vsel %vm56_vm0, %v2500_v33, -inf }
 0x39c   :  { %607 = vmax.xlane.f32.xlu1 %v606_v34 }
 0x3a2   :  { %v2504_v35 = vpop.f32.mrf.mxu3 }
 0x3a3   :  { %v609_v36 = vsel %vm56_vm0, %v2504_v35, -inf }
 0x3a4   :  { %610 = vmax.xlane.f32.xlu2 %v609_v36 }
 0x3df   :  { %v590_v39 = vpop.xlane.xlu1 %589 }
 0x3e0   :  { %vm612_vm3 = vcmp.ge.f32.partialorder %v2476_v41, %v590_v39 }
 0x3e1   :  { %v620_v40 = vsel %vm612_vm3, %v2508_v38, 64.0 }
 0x3e2   :  { %v628_v45 = vsel %vm56_vm0, %v620_v40, inf }
 0x3e3   :  { %629 = vmin.xlane.f32.xlu0 %v628_v45 }
 0x3e7   :  { %v593_v2 = vpop.xlane.xlu2 %592 }
 0x3e8   :  { %vm613_vm4 = vcmp.ge.f32.partialorder %v2480_v32, %v593_v2 }
 0x3e9   :  { %v621_v46 = vsel %vm613_vm4, %v2508_v38, 64.0 }
 0x3ea   :  { %v631_v48 = vsel %vm56_vm0, %v621_v46, inf }
 0x3eb   :  { %632 = vmin.xlane.f32.xlu1 %v631_v48 }
 0x3ef   :  { %v596_v49 = vpop.xlane.xlu0 %595 }
 0x3f0   :  { %vm614_vm5 = vcmp.ge.f32.partialorder %v2484_v26, %v596_v49 }
 0x3f1   :  { %v622_v50 = vsel %vm614_vm5, %v2508_v38, 64.0 }
 0x3f2   :  { %v634_v51 = vsel %vm56_vm0, %v622_v50, inf }
 0x3f3   :  { %635 = vmin.xlane.f32.xlu2 %v634_v51 }
 0x3f7   :  { %v599_v54 = vpop.xlane.xlu1 %598 }
 0x3f8   :  { %vm615_vm6 = vcmp.ge.f32.partialorder %v2488_v28, %v599_v54 }
 0x3f9   :  { %v623_v55 = vsel %vm615_vm6, %v2508_v38, 64.0 }
 0x3fa   :  { %v637_v56 = vsel %vm56_vm0, %v623_v55, inf }
 0x3fb   :  { %638 = vmin.xlane.f32.xlu0 %v637_v56 }
 0x3ff   :  { %v602_v9 = vpop.xlane.xlu2 %601 }
 0x400   :  { %vm616_vm8 = vcmp.ge.f32.partialorder %v2492_v0, %v602_v9 }
 0x401   :  { %v624_v53 = vsel %vm616_vm8, %v2508_v38, 64.0 }
 0x402   :  { %v640_v57 = vsel %vm56_vm0, %v624_v53, inf }
 0x403   :  { %641 = vmin.xlane.f32.xlu1 %v640_v57 }
 0x407   :  { %v605_v58 = vpop.xlane.xlu0 %604 }
 0x408   :  { %vm617_vm9 = vcmp.ge.f32.partialorder %v2496_v18, %v605_v58 }
 0x409   :  { %v625_v52 = vsel %vm617_vm9, %v2508_v38, 64.0 }
 0x40a   :  { %v643_v59 = vsel %vm56_vm0, %v625_v52, inf }
 0x40b   :  { %644 = vmin.xlane.f32.xlu2 %v643_v59 }
 0x40f   :  { %v608_v60 = vpop.xlane.xlu1 %607 }
 0x410   :  { %vm618_vm10 = vcmp.ge.f32.partialorder %v2500_v33, %v608_v60 }
 0x411   :  { %v626_v61 = vsel %vm618_vm10, %v2508_v38, 64.0 }
 0x412   :  { %v646_v62 = vsel %vm56_vm0, %v626_v61, inf  ;;  %v2050_v61 = vmov 0.0  }
 0x413   :  { %647 = vmin.xlane.f32.xlu0 %v646_v62 }
 0x417   :  { %v611_v1 = vpop.xlane.xlu2 %610 }
 0x418   :  { %vm619_vm11 = vcmp.ge.f32.partialorder %v2504_v35, %v611_v1 }
 0x419   :  { %v627_v63 = vsel %vm619_vm11, %v2508_v38, 64.0 }
 0x41a   :  { %v649_v5 = vsel %vm56_vm0, %v627_v63, inf }
 0x41b   :  { %650 = vmin.xlane.f32.xlu1 %v649_v5 }
 0x456   :  { %v2534_v6 = vpop.xlane.xlu0 %629 }
 0x457   :  { %vm652_vm12 = vcmp.eq.f32.partialorder %v2508_v38, %v2534_v6 }
 0x458   :  { %v2542_v7 = vsel %vm652_vm12, -inf, %v2476_v41  ;;  %v660_v62 = vsel %vm652_vm12, 1.0, %v2050_v61 }
 0x459   :  { %v676_v47 = vsel %vm56_vm0, %v2542_v7, -inf }
 0x45a   :  { %677 = vmax.xlane.f32.xlu2 %v676_v47 }
 0x45e   :  { %v2546_v11 = vpop.xlane.xlu1 %632 }
 0x45f   :  { %vm653_vm13 = vcmp.eq.f32.partialorder %v2508_v38, %v2546_v11 }
 0x460   :  { %v2554_v14 = vsel %vm653_vm13, -inf, %v2480_v32 }
 0x461   :  { %v679_v13 = vsel %vm56_vm0, %v2554_v14, -inf }
 0x462   :  { %680 = vmax.xlane.f32.xlu0 %v679_v13  ;;  %v661_v13 = vsel %vm653_vm13, 1.0, %v2050_v61 }
 0x466   :  { %v2558_v8 = vpop.xlane.xlu2 %635 }
 0x467   :  { %vm654_vm14 = vcmp.eq.f32.partialorder %v2508_v38, %v2558_v8 }
 0x468   :  { %v2566_v15 = vsel %vm654_vm14, -inf, %v2484_v26 }
 0x469   :  { %v682_v19 = vsel %vm56_vm0, %v2566_v15, -inf }
 0x46a   :  { %683 = vmax.xlane.f32.xlu1 %v682_v19 }
 0x46e   :  { %v2570_v44 = vpop.xlane.xlu0 %638 }
 0x46f   :  { %vm655_vm15 = vcmp.eq.f32.partialorder %v2508_v38, %v2570_v44 }
 0x470   :  { %v2578_v20 = vsel %vm655_vm15, -inf, %v2488_v28 }
 0x471   :  { %v685_v21 = vsel %vm56_vm0, %v2578_v20, -inf }
 0x472   :  { %686 = vmax.xlane.f32.xlu2 %v685_v21 }
 0x476   :  { %v2582_v12 = vpop.xlane.xlu1 %641 }
 0x477   :  { %vm656_vm1 = vcmp.eq.f32.partialorder %v2508_v38, %v2582_v12 }
 0x478   :  { %v2590_v23 = vsel %vm656_vm1, -inf, %v2492_v0 }
 0x479   :  { %v688_v42 = vsel %vm56_vm0, %v2590_v23, -inf }
 0x47a   :  { %689 = vmax.xlane.f32.xlu0 %v688_v42  ;;  %v662_v42 = vsel %vm654_vm14, 1.0, %v2050_v61 }
 0x47e   :  { %v2594_v24 = vpop.xlane.xlu2 %644 }
 0x47f   :  { %vm657_vm2 = vcmp.eq.f32.partialorder %v2508_v38, %v2594_v24 }
 0x480   :  { %v2602_v4 = vsel %vm657_vm2, -inf, %v2496_v18 }
 0x481   :  { %v691_v43 = vsel %vm56_vm0, %v2602_v4, -inf }
 0x482   :  { %692 = vmax.xlane.f32.xlu1 %v691_v43 }
 0x486   :  { %v2606_v17 = vpop.xlane.xlu0 %647 }
 0x487   :  { %vm658_vm3 = vcmp.eq.f32.partialorder %v2508_v38, %v2606_v17 }
 0x488   :  { %v2614_v3 = vsel %vm658_vm3, -inf, %v2500_v33 }
 0x489   :  { %v694_v22 = vsel %vm56_vm0, %v2614_v3, -inf }
 0x48a   :  { %695 = vmax.xlane.f32.xlu2 %v694_v22 }
 0x48e   :  { %v2618_v25 = vpop.xlane.xlu1 %650 }
 0x48f   :  { %vm659_vm4 = vcmp.eq.f32.partialorder %v2508_v38, %v2618_v25 }
 0x490   :  { %v2626_v27 = vsel %vm659_vm4, -inf, %v2504_v35 }
 0x491   :  { %v697_v29 = vsel %vm56_vm0, %v2626_v27, -inf }
 0x492   :  { %698 = vmax.xlane.f32.xlu0 %v697_v29  ;;  %v663_v29 = vsel %vm655_vm15, 1.0, %v2050_v61 }
 0x4cd   :  { %v678_v30 = vpop.xlane.xlu2 %677 }
 0x4ce   :  { %vm700_vm5 = vcmp.ge.f32.partialorder %v2542_v7, %v678_v30 }
 0x4cf   :  { %v708_v31 = vsel %vm700_vm5, %v2508_v38, 64.0 }
 0x4d0   :  { %v716_v34 = vsel %vm56_vm0, %v708_v31, inf }
 0x4d1   :  { %717 = vmin.xlane.f32.xlu1 %v716_v34  ;;  %v664_v34 = vsel %vm656_vm1, 1.0, %v2050_v61 }
 0x4d5   :  { %v681_v36 = vpop.xlane.xlu0 %680 }
 0x4d6   :  { %vm701_vm6 = vcmp.ge.f32.partialorder %v2554_v14, %v681_v36 }
 0x4d7   :  { %v709_v10 = vsel %vm701_vm6, %v2508_v38, 64.0 }
 0x4d8   :  { %v719_v37 = vsel %vm56_vm0, %v709_v10, inf }
 0x4d9   :  { %720 = vmin.xlane.f32.xlu2 %v719_v37  ;;  %v665_v37 = vsel %vm657_vm2, 1.0, %v2050_v61 }
 0x4dd   :  { %v684_v39 = vpop.xlane.xlu1 %683 }
 0x4de   :  { %vm702_vm8 = vcmp.ge.f32.partialorder %v2566_v15, %v684_v39 }
 0x4df   :  { %v710_v40 = vsel %vm702_vm8, %v2508_v38, 64.0 }
 0x4e0   :  { %v722_v45 = vsel %vm56_vm0, %v710_v40, inf }
 0x4e1   :  { %723 = vmin.xlane.f32.xlu0 %v722_v45  ;;  %v666_v45 = vsel %vm658_vm3, 1.0, %v2050_v61 }
 0x4e5   :  { %v687_v2 = vpop.xlane.xlu2 %686 }
 0x4e6   :  { %vm703_vm9 = vcmp.ge.f32.partialorder %v2578_v20, %v687_v2 }
 0x4e7   :  { %v711_v46 = vsel %vm703_vm9, %v2508_v38, 64.0 }
 0x4e8   :  { %v725_v48 = vsel %vm56_vm0, %v711_v46, inf }
 0x4e9   :  { %726 = vmin.xlane.f32.xlu1 %v725_v48  ;;  %v667_v48 = vsel %vm659_vm4, 1.0, %v2050_v61 }
 0x4ed   :  { %v690_v49 = vpop.xlane.xlu0 %689 }
 0x4ee   :  { %vm704_vm10 = vcmp.ge.f32.partialorder %v2590_v23, %v690_v49 }
 0x4ef   :  { %v712_v50 = vsel %vm704_vm10, %v2508_v38, 64.0 }
 0x4f0   :  { %v728_v51 = vsel %vm56_vm0, %v712_v50, inf }
 0x4f1   :  { %729 = vmin.xlane.f32.xlu2 %v728_v51 }
 0x4f5   :  { %v693_v54 = vpop.xlane.xlu1 %692 }
 0x4f6   :  { %vm705_vm11 = vcmp.ge.f32.partialorder %v2602_v4, %v693_v54 }
 0x4f7   :  { %v713_v55 = vsel %vm705_vm11, %v2508_v38, 64.0 }
 0x4f8   :  { %v731_v56 = vsel %vm56_vm0, %v713_v55, inf }
 0x4f9   :  { %732 = vmin.xlane.f32.xlu0 %v731_v56 }
 0x4fd   :  { %v696_v9 = vpop.xlane.xlu2 %695 }
 0x4fe   :  { %vm706_vm5 = vcmp.ge.f32.partialorder %v2614_v3, %v696_v9 }
 0x4ff   :  { %v714_v53 = vsel %vm706_vm5, %v2508_v38, 64.0 }
 0x500   :  { %v734_v57 = vsel %vm56_vm0, %v714_v53, inf }
 0x501   :  { %735 = vmin.xlane.f32.xlu1 %v734_v57 }
 0x505   :  { %v699_v58 = vpop.xlane.xlu0 %698 }
 0x506   :  { %vm707_vm6 = vcmp.ge.f32.partialorder %v2626_v27, %v699_v58 }
 0x507   :  { %v715_v52 = vsel %vm707_vm6, %v2508_v38, 64.0 }
 0x508   :  { %v737_v59 = vsel %vm56_vm0, %v715_v52, inf }
 0x509   :  { %738 = vmin.xlane.f32.xlu2 %v737_v59 }
 0x544   :  { %v718_v60 = vpop.xlane.xlu1 %717 }
 0x545   :  { %vm740_vm8 = vcmp.eq.f32.partialorder %v2508_v38, %v718_v60 }
 0x546   :  { %v2658_v1 = vsel %vm740_vm8, 1.0, %v660_v62  ;;  %v2661_v63 = vsel %vm740_vm8, -inf, %v2542_v7 }
 0x547   :  { %v764_v5 = vsel %vm56_vm0, %v2661_v63, -inf }
 0x548   :  { %765 = vmax.xlane.f32.xlu0 %v764_v5 }
 0x54c   :  { %v721_v47 = vpop.xlane.xlu2 %720 }
 0x54d   :  { %vm741_vm9 = vcmp.eq.f32.partialorder %v2508_v38, %v721_v47 }
 0x54e   :  { %v2669_v6 = vsel %vm741_vm9, 1.0, %v661_v13  ;;  %v2672_v19 = vsel %vm741_vm9, -inf, %v2554_v14 }
 0x54f   :  { %v767_v7 = vsel %vm56_vm0, %v2672_v19, -inf }
 0x550   :  { %768 = vmax.xlane.f32.xlu1 %v767_v7 }
 0x554   :  { %v724_v21 = vpop.xlane.xlu0 %723 }
 0x555   :  { %vm742_vm12 = vcmp.eq.f32.partialorder %v2508_v38, %v724_v21 }
 0x556   :  { %v2680_v11 = vsel %vm742_vm12, 1.0, %v662_v42  ;;  %v2683_v43 = vsel %vm742_vm12, -inf, %v2566_v15 }
 0x557   :  { %v770_v14 = vsel %vm56_vm0, %v2683_v43, -inf }
 0x558   :  { %771 = vmax.xlane.f32.xlu2 %v770_v14 }
 0x55c   :  { %v727_v22 = vpop.xlane.xlu1 %726 }
 0x55d   :  { %vm743_vm13 = vcmp.eq.f32.partialorder %v2508_v38, %v727_v22 }
 0x55e   :  { %v2691_v8 = vsel %vm743_vm13, 1.0, %v663_v29  ;;  %v2694_v30 = vsel %vm743_vm13, -inf, %v2578_v20 }
 0x55f   :  { %v773_v15 = vsel %vm56_vm0, %v2694_v30, -inf }
 0x560   :  { %774 = vmax.xlane.f32.xlu0 %v773_v15 }
 0x564   :  { %v730_v31 = vpop.xlane.xlu2 %729 }
 0x565   :  { %vm744_vm14 = vcmp.eq.f32.partialorder %v2508_v38, %v730_v31 }
 0x566   :  { %v2702_v44 = vsel %vm744_vm14, 1.0, %v664_v34  ;;  %v2705_v36 = vsel %vm744_vm14, -inf, %v2590_v23 }
 0x567   :  { %v776_v20 = vsel %vm56_vm0, %v2705_v36, -inf }
 0x568   :  { %777 = vmax.xlane.f32.xlu1 %v776_v20 }
 0x56c   :  { %v733_v10 = vpop.xlane.xlu0 %732 }
 0x56d   :  { %vm745_vm15 = vcmp.eq.f32.partialorder %v2508_v38, %v733_v10 }
 0x56e   :  { %v2713_v12 = vsel %vm745_vm15, 1.0, %v665_v37  ;;  %v2716_v39 = vsel %vm745_vm15, -inf, %v2602_v4 }
 0x56f   :  { %v779_v23 = vsel %vm56_vm0, %v2716_v39, -inf }
 0x570   :  { %780 = vmax.xlane.f32.xlu2 %v779_v23 }
 0x574   :  { %v736_v40 = vpop.xlane.xlu1 %735 }
 0x575   :  { %vm746_vm1 = vcmp.eq.f32.partialorder %v2508_v38, %v736_v40 }
 0x576   :  { %v2724_v24 = vsel %vm746_vm1, 1.0, %v666_v45  ;;  %v2727_v2 = vsel %vm746_vm1, -inf, %v2614_v3 }
 0x577   :  { %v782_v4 = vsel %vm56_vm0, %v2727_v2, -inf }
 0x578   :  { %783 = vmax.xlane.f32.xlu0 %v782_v4 }
 0x57c   :  { %v739_v46 = vpop.xlane.xlu2 %738 }
 0x57d   :  { %vm747_vm2 = vcmp.eq.f32.partialorder %v2508_v38, %v739_v46 }
 0x57e   :  { %v2735_v17 = vsel %vm747_vm2, 1.0, %v667_v48  ;;  %v2738_v49 = vsel %vm747_vm2, -inf, %v2626_v27 }
 0x57f   :  { %v785_v3 = vsel %vm56_vm0, %v2738_v49, -inf }
 0x580   :  { %786 = vmax.xlane.f32.xlu1 %v785_v3 }
 0x5bb   :  { %v766_v50 = vpop.xlane.xlu0 %765 }
 0x5bc   :  { %vm788_vm3 = vcmp.ge.f32.partialorder %v2661_v63, %v766_v50 }
 0x5bd   :  { %v796_v51 = vsel %vm788_vm3, %v2508_v38, 64.0 }
 0x5be   :  { %v804_v54 = vsel %vm56_vm0, %v796_v51, inf }
 0x5bf   :  { %805 = vmin.xlane.f32.xlu2 %v804_v54 }
 0x5c3   :  { %v769_v25 = vpop.xlane.xlu1 %768 }
 0x5c4   :  { %vm789_vm4 = vcmp.ge.f32.partialorder %v2672_v19, %v769_v25 }
 0x5c5   :  { %v797_v55 = vsel %vm789_vm4, %v2508_v38, 64.0 }
 0x5c6   :  { %v807_v27 = vsel %vm56_vm0, %v797_v55, inf }
 0x5c7   :  { %808 = vmin.xlane.f32.xlu0 %v807_v27 }
 0x5cb   :  { %v772_v56 = vpop.xlane.xlu2 %771 }
 0x5cc   :  { %vm790_vm10 = vcmp.ge.f32.partialorder %v2683_v43, %v772_v56 }
 0x5cd   :  { %v798_v9 = vsel %vm790_vm10, %v2508_v38, 64.0 }
 0x5ce   :  { %v810_v53 = vsel %vm56_vm0, %v798_v9, inf }
 0x5cf   :  { %811 = vmin.xlane.f32.xlu1 %v810_v53 }
 0x5d3   :  { %v775_v57 = vpop.xlane.xlu0 %774 }
 0x5d4   :  { %vm791_vm11 = vcmp.ge.f32.partialorder %v2694_v30, %v775_v57 }
 0x5d5   :  { %v799_v58 = vsel %vm791_vm11, %v2508_v38, 64.0 }
 0x5d6   :  { %v813_v52 = vsel %vm56_vm0, %v799_v58, inf }
 0x5d7   :  { %814 = vmin.xlane.f32.xlu2 %v813_v52 }
 0x5db   :  { %v778_v59 = vpop.xlane.xlu1 %777 }
 0x5dc   :  { %vm792_vm5 = vcmp.ge.f32.partialorder %v2705_v36, %v778_v59 }
 0x5dd   :  { %v800_v60 = vsel %vm792_vm5, %v2508_v38, 64.0 }
 0x5de   :  { %v816_v61 = vsel %vm56_vm0, %v800_v60, inf }
 0x5df   :  { %817 = vmin.xlane.f32.xlu0 %v816_v61 }
 0x5e3   :  { %v781_v62 = vpop.xlane.xlu2 %780 }
 0x5e4   :  { %vm793_vm6 = vcmp.ge.f32.partialorder %v2716_v39, %v781_v62 }
 0x5e5   :  { %v801_v5 = vsel %vm793_vm6, %v2508_v38, 64.0 }
 0x5e6   :  { %v819_v47 = vsel %vm56_vm0, %v801_v5, inf }
 0x5e7   :  { %820 = vmin.xlane.f32.xlu1 %v819_v47 }
 0x5eb   :  { %v784_v13 = vpop.xlane.xlu0 %783 }
 0x5ec   :  { %vm794_vm8 = vcmp.ge.f32.partialorder %v2727_v2, %v784_v13 }
 0x5ed   :  { %v802_v7 = vsel %vm794_vm8, %v2508_v38, 64.0 }
 0x5ee   :  { %v822_v21 = vsel %vm56_vm0, %v802_v7, inf }
 0x5ef   :  { %823 = vmin.xlane.f32.xlu2 %v822_v21 }
 0x5f3   :  { %v787_v42 = vpop.xlane.xlu1 %786 }
 0x5f4   :  { %vm795_vm9 = vcmp.ge.f32.partialorder %v2738_v49, %v787_v42 }
 0x5f5   :  { %v803_v14 = vsel %vm795_vm9, %v2508_v38, 64.0 }
 0x5f6   :  { %v825_v22 = vsel %vm56_vm0, %v803_v14, inf }
 0x5f7   :  { %826 = vmin.xlane.f32.xlu0 %v825_v22 }
 0x632   :  { %v806_v29 = vpop.xlane.xlu2 %805 }
 0x633   :  { %vm828_vm12 = vcmp.eq.f32.partialorder %v2508_v38, %v806_v29 }
 0x634   :  { %v2768_v15 = vsel %vm828_vm12, 1.0, %v2658_v1  ;;  %v844_v31 = vsel %vm828_vm12, -inf, %v2661_v63 }
 0x635   :  { %v852_v34 = vsel %vm56_vm0, %v844_v31, -inf }
 0x636   :  { %853 = vmax.xlane.f32.xlu1 %v852_v34  ;;  %v2051_v34 = vmov 0  }
 0x637   :  { %1890 = vset.pattern.permute.xlu1 %v2051_v34  ;;  %1889 = vset.pattern.permute.xlu0 %v2051_v34 }
 0x63a   :  { %v809_v20 = vpop.xlane.xlu0 %808 }
 0x63b   :  { %vm829_vm13 = vcmp.eq.f32.partialorder %v2508_v38, %v809_v20  ;;  %v1025_v20 = vld [vmem:[%s3330_s4 + $0x30] sm:$0xff] }
 0x63c   :  { %v2774_v10 = vsel %vm829_vm13, 1.0, %v2669_v6  ;;  %v845_v37 = vsel %vm829_vm13, -inf, %v2672_v19 }
 0x63d   :  { %v855_v23 = vsel %vm56_vm0, %v845_v37, -inf }
 0x63e   :  { %856 = vmax.xlane.f32.xlu2 %v855_v23 }
 0x642   :  { %v812_v40 = vpop.xlane.xlu1 %811 }
 0x643   :  { %vm830_vm14 = vcmp.eq.f32.partialorder %v2508_v38, %v812_v40  ;;  %v1023_v40 = vld [vmem:[%s3330_s4 + $0x20] sm:$0xff] }
 0x644   :  { %v2780_v1 = vsel %vm830_vm14, 1.0, %v2680_v11  ;;  %v846_v63 = vsel %vm830_vm14, -inf, %v2683_v43 }
 0x645   :  { %v858_v45 = vsel %vm56_vm0, %v846_v63, -inf }
 0x646   :  { %859 = vmax.xlane.f32.xlu0 %v858_v45 }
 0x64a   :  { %v815_v4 = vpop.xlane.xlu2 %814 }
 0x64b   :  { %vm831_vm15 = vcmp.eq.f32.partialorder %v2508_v38, %v815_v4 }
 0x64c   :  { %v2786_v6 = vsel %vm831_vm15, 1.0, %v2691_v8  ;;  %v847_v19 = vsel %vm831_vm15, -inf, %v2694_v30 }
 0x64d   :  { %v861_v46 = vsel %vm56_vm0, %v847_v19, -inf }
 0x64e   :  { %862 = vmax.xlane.f32.xlu1 %v861_v46  ;;  %v1021_v46 = vld [vmem:[%s3330_s4 + $0x10] sm:$0xff] }
 0x652   :  { %v818_v48 = vpop.xlane.xlu0 %817 }
 0x653   :  { %vm832_vm1 = vcmp.eq.f32.partialorder %v2508_v38, %v818_v48 }
 0x654   :  { %v2792_v11 = vsel %vm832_vm1, 1.0, %v2702_v44  ;;  %v848_v43 = vsel %vm832_vm1, -inf, %v2705_v36 }
 0x655   :  { %v864_v3 = vsel %vm56_vm0, %v848_v43, -inf }
 0x656   :  { %865 = vmax.xlane.f32.xlu2 %v864_v3  ;;  %v1019_v3 = vld [vmem:[%s3330_s4] sm:$0xff] }
 0x65a   :  { %v821_v50 = vpop.xlane.xlu1 %820 }
 0x65b   :  { %vm833_vm2 = vcmp.eq.f32.partialorder %v2508_v38, %v821_v50 }
 0x65c   :  { %v2798_v8 = vsel %vm833_vm2, 1.0, %v2713_v12  ;;  %v849_v30 = vsel %vm833_vm2, -inf, %v2716_v39 }
 0x65d   :  { %v867_v51 = vsel %vm56_vm0, %v849_v30, -inf }
 0x65e   :  { %868 = vmax.xlane.f32.xlu0 %v867_v51 }
 0x662   :  { %v824_v54 = vpop.xlane.xlu2 %823 }
 0x663   :  { %vm834_vm3 = vcmp.eq.f32.partialorder %v2508_v38, %v824_v54 }
 0x664   :  { %v2804_v44 = vsel %vm834_vm3, 1.0, %v2724_v24  ;;  %v850_v36 = vsel %vm834_vm3, -inf, %v2727_v2 }
 0x665   :  { %v870_v25 = vsel %vm56_vm0, %v850_v36, -inf }
 0x666   :  { %871 = vmax.xlane.f32.xlu1 %v870_v25 }
 0x66a   :  { %v827_v55 = vpop.xlane.xlu0 %826 }
 0x66b   :  { %vm835_vm4 = vcmp.eq.f32.partialorder %v2508_v38, %v827_v55 }
 0x66c   :  { %v2810_v12 = vsel %vm835_vm4, 1.0, %v2735_v17  ;;  %v851_v39 = vsel %vm835_vm4, -inf, %v2738_v49 }
 0x66d   :  { %v873_v27 = vsel %vm56_vm0, %v851_v39, -inf }
 0x66e   :  { %874 = vmax.xlane.f32.xlu2 %v873_v27 }
 0x6a9   :  { %v854_v56 = vpop.xlane.xlu1 %853 }
 0x6aa   :  { %vm876_vm10 = vcmp.ge.f32.partialorder %v844_v31, %v854_v56 }
 0x6ab   :  { %v884_v24 = vsel %vm876_vm10, %v2508_v38, 64.0 }
 0x6ac   :  { %v892_v2 = vsel %vm56_vm0, %v884_v24, inf }
 0x6ad   :  { %893 = vmin.xlane.f32.xlu0 %v892_v2 }
 0x6b1   :  { %v857_v9 = vpop.xlane.xlu2 %856 }
 0x6b2   :  { %vm877_vm11 = vcmp.ge.f32.partialorder %v845_v37, %v857_v9  ;;  %v1024_v37 = vld [vmem:[%s3330_s4 + $0x28] sm:$0xff] }
 0x6b3   :  { %v885_v53 = vsel %vm877_vm11, %v2508_v38, 64.0 }
 0x6b4   :  { %v895_v57 = vsel %vm56_vm0, %v885_v53, inf }
 0x6b5   :  { %896 = vmin.xlane.f32.xlu1 %v895_v57 }
 0x6b9   :  { %v860_v17 = vpop.xlane.xlu0 %859 }
 0x6ba   :  { %vm878_vm5 = vcmp.ge.f32.partialorder %v846_v63, %v860_v17 }
 0x6bb   :  { %v886_v49 = vsel %vm878_vm5, %v2508_v38, 64.0 }
 0x6bc   :  { %v898_v58 = vsel %vm56_vm0, %v886_v49, inf }
 0x6bd   :  { %899 = vmin.xlane.f32.xlu2 %v898_v58 }
 0x6c1   :  { %v863_v52 = vpop.xlane.xlu1 %862 }
 0x6c2   :  { %vm879_vm6 = vcmp.ge.f32.partialorder %v847_v19, %v863_v52  ;;  %v1026_v19 = vld [vmem:[%s3330_s4 + $0x38] sm:$0xff] }
 0x6c3   :  { %v887_v59 = vsel %vm879_vm6, %v2508_v38, 64.0 }
 0x6c4   :  { %v901_v60 = vsel %vm56_vm0, %v887_v59, inf }
 0x6c5   :  { %902 = vmin.xlane.f32.xlu0 %v901_v60 }
 0x6c9   :  { %v866_v61 = vpop.xlane.xlu2 %865 }
 0x6ca   :  { %vm880_vm8 = vcmp.ge.f32.partialorder %v848_v43, %v866_v61  ;;  %v1022_v43 = vld [vmem:[%s3330_s4 + $0x18] sm:$0xff] }
 0x6cb   :  { %v888_v62 = vsel %vm880_vm8, %v2508_v38, 64.0 }
 0x6cc   :  { %v904_v5 = vsel %vm56_vm0, %v888_v62, inf }
 0x6cd   :  { %905 = vmin.xlane.f32.xlu1 %v904_v5 }
 0x6d1   :  { %v869_v47 = vpop.xlane.xlu0 %868 }
 0x6d2   :  { %vm881_vm9 = vcmp.ge.f32.partialorder %v849_v30, %v869_v47  ;;  %v1020_v30 = vld [vmem:[%s3330_s4 + $0x8] sm:$0xff] }
 0x6d3   :  { %v889_v13 = vsel %vm881_vm9, %v2508_v38, 64.0 }
 0x6d4   :  { %v907_v7 = vsel %vm56_vm0, %v889_v13, inf }
 0x6d5   :  { %908 = vmin.xlane.f32.xlu2 %v907_v7 }
 0x6d9   :  { %v872_v21 = vpop.xlane.xlu1 %871 }
 0x6da   :  { %vm882_vm12 = vcmp.ge.f32.partialorder %v850_v36, %v872_v21 }
 0x6db   :  { %v890_v42 = vsel %vm882_vm12, %v2508_v38, 64.0 }
 0x6dc   :  { %v910_v14 = vsel %vm56_vm0, %v890_v42, inf }
 0x6dd   :  { %911 = vmin.xlane.f32.xlu0 %v910_v14 }
 0x6e1   :  { %v875_v22 = vpop.xlane.xlu2 %874 }
 0x6e2   :  { %vm883_vm13 = vcmp.ge.f32.partialorder %v851_v39, %v875_v22 }
 0x6e3   :  { %v891_v29 = vsel %vm883_vm13, %v2508_v38, 64.0 }
 0x6e4   :  { %v913_v31 = vsel %vm56_vm0, %v891_v29, inf }
 0x6e5   :  { %914 = vmin.xlane.f32.xlu1 %v913_v31 }
 0x6f1   :  { %1064 = vperm.xlu0 %1889, %v1026_v19  }
 0x6f9   :  { %1044 = vperm.xlu0 %1889, %v1022_v43  }
 0x6fe   :  { %1059 = vperm.xlu1 %1890, %v1025_v20  }
 0x701   :  { %1034 = vperm.xlu0 %1889, %v1020_v30  }
 0x706   :  { %1054 = vperm.xlu1 %1890, %v1024_v37  }
 0x70e   :  { %1049 = vperm.xlu1 %1890, %v1023_v40  }
 0x716   :  { %1039 = vperm.xlu1 %1890, %v1021_v46  }
 0x71e   :  { %1029 = vperm.xlu1 %1890, %v1019_v3  }
 0x720   :  { %v894_v23 = vpop.xlane.xlu0 %893 }
 0x721   :  { %vm916_vm14 = vcmp.eq.f32.partialorder %v2508_v38, %v894_v23 }
 0x722   :  { %v924_v63 = vsel %vm916_vm14, 1.0, %v2768_v15 }
 0x723   :  { %vm932_vm15 = vcmp.gt.f32.partialorder %v924_v63, 0.0 }
 0x724   :  { %v2842_v45 = vsel %vm932_vm15, %v2476_v41, 0.0 }
 0x725   :  { %948 = vxpose.xlu2.b32.start [1/8] (short) (narrow) %v2842_v45, 64 }
 0x728   :  { %v897_v4 = vpop.xlane.xlu1 %896 }
 0x729   :  { %vm917_vm1 = vcmp.eq.f32.partialorder %v2508_v38, %v897_v4 }
 0x72a   :  { %v925_v15 = vsel %vm917_vm1, 1.0, %v2774_v10 }
 0x72b   :  { %vm933_vm2 = vcmp.gt.f32.partialorder %v925_v15, 0.0 }
 0x72c   :  { %v2854_v41 = vsel %vm933_vm2, %v2480_v32, 0.0 }
 0x72d   :  { %949 = vxpose.xlu2.b32.cont [2/8] (short) (narrow) %v2854_v41, 64 }
 0x730   :  { %v900_v48 = vpop.xlane.xlu2 %899 }
 0x731   :  { %vm918_vm3 = vcmp.eq.f32.partialorder %v2508_v38, %v900_v48 }
 0x732   :  { %v926_v10 = vsel %vm918_vm3, 1.0, %v2780_v1 }
 0x733   :  { %vm934_vm4 = vcmp.gt.f32.partialorder %v926_v10, 0.0 }
 0x734   :  { %v2866_v32 = vsel %vm934_vm4, %v2484_v26, 0.0 }
 0x735   :  { %950 = vxpose.xlu2.b32.cont [3/8] (short) (narrow) %v2866_v32, 64 }
 0x738   :  { %v903_v50 = vpop.xlane.xlu0 %902 }
 0x739   :  { %vm919_vm10 = vcmp.eq.f32.partialorder %v2508_v38, %v903_v50 }
 0x73a   :  { %v927_v51 = vsel %vm919_vm10, 1.0, %v2786_v6 }
 0x73b   :  { %vm935_vm11 = vcmp.gt.f32.partialorder %v927_v51, 0.0 }
 0x73c   :  { %v2875_v1 = vsel %vm935_vm11, %v2488_v28, 0.0 }
 0x73d   :  { %951 = vxpose.xlu2.b32.cont [4/8] (short) (narrow) %v2875_v1, 64 }
 0x740   :  { %v906_v26 = vpop.xlane.xlu1 %905 }
 0x741   :  { %vm920_vm5 = vcmp.eq.f32.partialorder %v2508_v38, %v906_v26 }
 0x742   :  { %v928_v54 = vsel %vm920_vm5, 1.0, %v2792_v11 }
 0x743   :  { %vm936_vm6 = vcmp.gt.f32.partialorder %v928_v54, 0.0 }
 0x744   :  { %v2881_v36 = vsel %vm936_vm6, %v2492_v0, 0.0 }
 0x745   :  { %952 = vxpose.xlu2.b32.cont [5/8] (short) (narrow) %v2881_v36, 64 }
 0x748   :  { %v909_v25 = vpop.xlane.xlu2 %908 }
 0x749   :  { %vm921_vm8 = vcmp.eq.f32.partialorder %v2508_v38, %v909_v25 }
 0x74a   :  { %v929_v6 = vsel %vm921_vm8, 1.0, %v2798_v8 }
 0x74b   :  { %vm937_vm9 = vcmp.gt.f32.partialorder %v929_v6, 0.0 }
 0x74c   :  { %v2887_v28 = vsel %vm937_vm9, %v2496_v18, 0.0 }
 0x74d   :  { %953 = vxpose.xlu2.b32.cont [6/8] (short) (narrow) %v2887_v28, 64 }
 0x750   :  { %v912_v55 = vpop.xlane.xlu0 %911 }
 0x751   :  { %vm922_vm12 = vcmp.eq.f32.partialorder %v2508_v38, %v912_v55 }
 0x752   :  { %v930_v11 = vsel %vm922_vm12, 1.0, %v2804_v44 }
 0x753   :  { %vm938_vm13 = vcmp.gt.f32.partialorder %v930_v11, 0.0 }
 0x754   :  { %v2893_v0 = vsel %vm938_vm13, %v2500_v33, 0.0  ;;  %v996_v33 = vld [vmem:[%s3331_s5] sm:$0x1]  ;;  %s2052_s5 = smov [#allocation2]  }
 0x755   :  { %954 = vxpose.xlu2.b32.cont [7/8] (short) (narrow) %v2893_v0, 64  ;;  %v997_v24 = vsub.f32 0.0, %v996_v33  ;;  %s1750_s17 = sshll.u32 %s2052_s5, 4  ;;  %s1751_s17 = int_to_ptr.vmem [resolvable:$true] %s1750_s17 }
 0x758   :  { %v915_v39 = vpop.xlane.xlu1 %914 }
 0x759   :  { %vm923_vm14 = vcmp.eq.f32.partialorder %v2508_v38, %v915_v39  ;;  %v998_v38 = vmul.f32 1.442695, %v997_v24 }
 0x75a   :  { %v931_v8 = vsel %vm923_vm14, 1.0, %v2810_v12 }
 0x75b   :  { %vm939_vm15 = vcmp.gt.f32.partialorder %v931_v8, 0.0  ;;  %1929 = vpow2.f32 %v998_v38 }
 0x75c   :  { %v2899_v18 = vsel %vm939_vm15, %v2504_v35, 0.0 }
 0x75d   :  { %955 = vxpose.xlu2.b32.end [8/8] (short) (narrow) %v2899_v18, 64 }
 0x761   :  { %v1930_v35 = vpop.eup %1929 }
 0x762   :  { %v2914_v17 = vperm.slane %v1930_v35, 0 }
 0x763   :  { %v2911_v2 = vpop.permute.xlu0 %1064 }
 0x76b   :  { %v1045_v57 = vpop.permute.xlu0 %1044 }
 0x770   :  { %v2902_v27 = vpop.permute.xlu1 %1059 }
 0x773   :  { %v1035_v47 = vpop.permute.xlu0 %1034 }
 0x778   :  { %v2904_v44 = vpop.permute.xlu1 %1054 }
 0x780   :  { %v2909_v56 = vpop.permute.xlu1 %1049 }
 0x788   :  { %v1040_v12 = vpop.permute.xlu1 %1039 }
 0x790   :  { %v1030_v58 = vpop.permute.xlu1 %1029 }
 0x7be   :  { %v964_v9 = vpop.trf.xlu2 }
 0x7bf   :  { %v980_v53 = vadd.f32 %v964_v9, %v2842_v45 }
 0x7c1   :  { %v2916_v49 = vmul.f32 0.5, %v980_v53 }
 0x7c3   :  { %vm1000_vm1 = vcmp.gt.f32.partialorder %v2916_v49, 0.0 }
 0x7c4   :  { %v1011_v52 = vsel %vm1000_vm1, %v2914_v17, 0.0 }
 0x7c5   :  { %v1067_v59 = vsub.f32 %v1011_v52, %v1030_v58 }
 0x7c6   :  { %v965_v60 = vpop.trf.xlu2 }
 0x7c7   :  { %v1825_v61 = vmul.f32 -1.442695, %v1067_v59  ;;  %v981_v62 = vadd.f32 %v965_v60, %v2854_v41 }
 0x7c9   :  { %1931 = vpow2.f32 %v1825_v61  ;;  %v2921_v5 = vmul.f32 0.5, %v981_v62 }
 0x7cb   :  { %vm1001_vm2 = vcmp.gt.f32.partialorder %v2921_v5, 0.0 }
 0x7cc   :  { %v1012_v13 = vsel %vm1001_vm2, %v2914_v17, 0.0 }
 0x7cd   :  { %v1068_v7 = vsub.f32 %v1012_v13, %v1035_v47 }
 0x7ce   :  { %v966_v21 = vpop.trf.xlu2 }
 0x7cf   :  { %v1932_v42 = vpop.eup %1931  ;;  %v1826_v14 = vmul.f32 -1.442695, %v1068_v7  ;;  %v982_v22 = vadd.f32 %v966_v21, %v2866_v32 }
 0x7d0   :  { %v1099_v29 = vadd.f32 1.0, %v1932_v42 }
 0x7d1   :  { %1933 = vpow2.f32 %v1826_v14  ;;  %v2926_v31 = vmul.f32 0.5, %v982_v22 }
 0x7d2   :  { %1935 = vrcp.f32 %v1099_v29  ;;  %v1116_v3 = vand.u32 2147483647, %v1099_v29  ;;  %v1118_v10 = vand.u32 2147483648, %v1099_v29  ;;  %vm1112_vm11 = vweird.f32 %v1099_v29 }
 0x7d3   :  { %vm1002_vm3 = vcmp.gt.f32.partialorder %v2926_v31, 0.0 }
 0x7d4   :  { %v1013_v34 = vsel %vm1002_vm3, %v2914_v17, 0.0  ;;  %v1119_v55 = vor.u32 1.1754944e-38, %v1118_v10  ;;  %vm1117_vm8 = vcmp.eq.f32.partialorder %v1116_v3, 8.507059e+37 }
 0x7d5   :  { %v1069_v20 = vsub.f32 %v1013_v34, %v1040_v12 }
 0x7d6   :  { %v967_v37 = vpop.trf.xlu2 }
 0x7d7   :  { %v1934_v23 = vpop.eup %1933  ;;  %v1827_v40 = vmul.f32 -1.442695, %v1069_v20  ;;  %v983_v63 = vadd.f32 %v967_v37, %v2875_v1  ;;  %v1981_v20 = vld [vmem:[%s3327_s1] sm:$0xff] }
 0x7d8   :  { %v1936_v45 = vpop.eup %1935  ;;  %v1100_v4 = vadd.f32 1.0, %v1934_v23 }
 0x7d9   :  { %v1108_v19 = vmul.f32 %v1936_v45, %v1099_v29  ;;  %1937 = vpow2.f32 %v1827_v40  ;;  %v2931_v46 = vmul.f32 0.5, %v983_v63  ;;  %vm1113_vm10 = vweird.f32 %v1936_v45 }
 0x7da   :  { %1939 = vrcp.f32 %v1100_v4  ;;  %vm1114_vm5 = vmor %vm1112_vm11, %vm1113_vm10  ;;  %v1131_v12 = vand.u32 2147483647, %v1100_v4  ;;  %v1133_v35 = vand.u32 2147483648, %v1100_v4  ;;  %vm1127_vm13 = vweird.f32 %v1100_v4 }
 0x7db   :  { %v1109_v15 = vsub.f32 1.0, %v1108_v19  ;;  %vm1003_vm4 = vcmp.gt.f32.partialorder %v2931_v46, 0.0 }
 0x7dc   :  { %v1014_v41 = vsel %vm1003_vm4, %v2914_v17, 0.0  ;;  %v1134_v47 = vor.u32 1.1754944e-38, %v1133_v35  ;;  %vm1132_vm15 = vcmp.eq.f32.partialorder %v1131_v12, 8.507059e+37  ;;  %v1982_v12 = vld [vmem:[%s3327_s1 + $0x8] sm:$0xff] }
 0x7dd   :  { %v1110_v48 = vmul.f32 %v1936_v45, %v1109_v15  ;;  %v1070_v43 = vsub.f32 %v1014_v41, %v1045_v57 }
 0x7de   :  { %v968_v32 = vpop.trf.xlu2 }
 0x7df   :  { %v1938_v50 = vpop.eup %1937  ;;  %v1111_v30 = vadd.f32 %v1936_v45, %v1110_v48  ;;  %v1828_v51 = vmul.f32 -1.442695, %v1070_v43  ;;  %v984_v1 = vadd.f32 %v968_v32, %v2881_v36 }
 0x7e0   :  { %v1940_v26 = vpop.eup %1939  ;;  %v2936_v54 = vadd.f32 1.0, %v1938_v50 }
 0x7e1   :  { %v1123_v25 = vmul.f32 %v1940_v26, %v1100_v4  ;;  %1941 = vpow2.f32 %v1828_v51  ;;  %v2938_v6 = vmul.f32 0.5, %v984_v1  ;;  %v1115_v39 = vsel %vm1114_vm5, %v1936_v45, %v1111_v30 }
 0x7e2   :  { %1943 = vrcp.f32 %v2936_v54  ;;  %v1120_v36 = vsel %vm1117_vm8, %v1119_v55, %v1115_v39  ;;  %vm1128_vm9 = vweird.f32 %v1940_v26  ;;  %v1146_v13 = vand.u32 2147483647, %v2936_v54 }
 0x7e3   :  { %v1124_v11 = vsub.f32 1.0, %v1123_v25  ;;  %vm1004_vm6 = vcmp.gt.f32.partialorder %v2938_v6, 0.0  ;;  %v1227_v38 = vmul.f32 2.0, %v1120_v36  ;;  %vm1129_vm14 = vmor %vm1127_vm13, %vm1128_vm9  ;;  %v1148_v42 = vand.u32 2147483648, %v2936_v54 }
 0x7e4   :  { %v1015_v8 = vsel %vm1004_vm6, %v2914_v17, 0.0  ;;  %vm1142_vm3 = vweird.f32 %v2936_v54  ;;  %vm1147_vm10 = vcmp.eq.f32.partialorder %v1146_v13, 8.507059e+37 }
 0x7e5   :  { %v1125_v33 = vmul.f32 %v1940_v26, %v1124_v11  ;;  %v1071_v24 = vsub.f32 %v1015_v8, %v2909_v56  ;;  %vm1235_vm12 = vcmp.ge.f32.partialorder %v1227_v38, 1.0  ;;  %v1149_v15 = vor.u32 1.1754944e-38, %v1148_v42 }
 0x7e6   :  { %v969_v9 = vpop.trf.xlu2  ;;  %v1243_v61 = vsel %vm1235_vm12, %v1227_v38, 0.1 }
 0x7e7   :  { %v1942_v53 = vpop.eup %1941  ;;  %v1126_v57 = vadd.f32 %v1940_v26, %v1125_v33  ;;  %v1829_v58 = vmul.f32 -1.442695, %v1071_v24  ;;  %v985_v52 = vadd.f32 %v969_v9, %v2887_v28  ;;  %v1251_v7 = vmul.f32 %v1243_v61, %v2916_v49 }
 0x7e8   :  { %v1944_v59 = vpop.eup %1943  ;;  %v2945_v60 = vadd.f32 1.0, %v1942_v53 }
 0x7e9   :  { %v1138_v62 = vmul.f32 %v1944_v59, %v2936_v54  ;;  %1945 = vpow2.f32 %v1829_v58  ;;  %v2948_v56 = vmul.f32 0.5, %v985_v52  ;;  %v1130_v21 = vsel %vm1129_vm14, %v1940_v26, %v1126_v57  ;;  %1267 = vst.msk [vmem:[#allocation2] sm:$0xff] %vm56_vm0, %v1251_v7 }
 0x7ea   :  { %1947 = vrcp.f32 %v2945_v60  ;;  %vm1143_vm2 = vweird.f32 %v1944_v59  ;;  %v1135_v22 = vsel %vm1132_vm15, %v1134_v47, %v1130_v21  ;;  %v2961_v37 = vadd.f32 %v1981_v20, %v1251_v7 }
 0x7eb   :  { %v1139_v28 = vsub.f32 1.0, %v1138_v62  ;;  %vm1005_vm1 = vcmp.gt.f32.partialorder %v2948_v56, 0.0  ;;  %v1228_v23 = vmul.f32 2.0, %v1135_v22  ;;  %vm1144_vm4 = vmor %vm1142_vm3, %vm1143_vm2  ;;  %v1163_v30 = vand.u32 2147483648, %v2945_v60 }
 0x7ec   :  { %v1016_v14 = vsel %vm1005_vm1, %v2914_v17, 0.0  ;;  %v1283_v4 = vsel %vm56_vm0, %v2961_v37, 0.0  ;;  %1275 = vst.msk [vmem:[#allocation4] sm:$0xff] %vm56_vm0, %v2961_v37  ;;  %vm1157_vm9 = vweird.f32 %v2945_v60 }
 0x7ed   :  { %v1140_v29 = vmul.f32 %v1944_v59, %v1139_v28  ;;  %v1072_v34 = vsub.f32 %v1016_v14, %v2904_v44  ;;  %1284 = vadd.xlane.f32.xlu0 %v1283_v4  ;;  %vm1236_vm11 = vcmp.ge.f32.partialorder %v1228_v23, 1.0  ;;  %v1164_v24 = vor.u32 1.1754944e-38, %v1163_v30 }
 0x7ee   :  { %v970_v49 = vpop.trf.xlu2  ;;  %v1244_v51 = vsel %vm1236_vm11, %v1228_v23, 0.1 }
 0x7ef   :  { %v1946_v40 = vpop.eup %1945  ;;  %v1141_v63 = vadd.f32 %v1944_v59, %v1140_v29  ;;  %v1830_v45 = vmul.f32 -1.442695, %v1072_v34  ;;  %v986_v44 = vadd.f32 %v970_v49, %v2893_v0  ;;  %v1161_v0 = vand.u32 2147483647, %v2945_v60  ;;  %v1984_v34 = vld [vmem:[%s3327_s1 + $0x18] sm:$0xff] }
 0x7f0   :  { %v1948_v19 = vpop.eup %1947  ;;  %v2971_v41 = vadd.f32 1.0, %v1946_v40  ;;  %v1252_v25 = vmul.f32 %v1244_v51, %v2921_v5 }
 0x7f1   :  { %v1145_v48 = vsel %vm1144_vm4, %v1944_v59, %v1141_v63  ;;  %v1153_v43 = vmul.f32 %v1948_v19, %v2945_v60  ;;  %1949 = vpow2.f32 %v1830_v45  ;;  %v2975_v50 = vmul.f32 0.5, %v986_v44 }
 0x7f2   :  { %v1150_v3 = vsel %vm1147_vm10, %v1149_v15, %v1145_v48  ;;  %1951 = vrcp.f32 %v2971_v41  ;;  %vm1158_vm6 = vweird.f32 %v1948_v19  ;;  %v2990_v35 = vadd.f32 %v1982_v12, %v1252_v25  ;;  %1268 = vst.msk [vmem:[#allocation2 + $0x8] sm:$0xff] %vm56_vm0, %v1252_v25 }
 0x7f3   :  { %v1229_v10 = vmul.f32 2.0, %v1150_v3  ;;  %v1154_v32 = vsub.f32 1.0, %v1153_v43  ;;  %vm1006_vm8 = vcmp.gt.f32.partialorder %v2975_v50, 0.0  ;;  %vm1159_vm12 = vmor %vm1157_vm9, %vm1158_vm6  ;;  %vm1162_vm13 = vcmp.eq.f32.partialorder %v1161_v0, 8.507059e+37 }
 0x7f4   :  { %v1017_v54 = vsel %vm1006_vm8, %v2914_v17, 0.0  ;;  %v1176_v58 = vand.u32 2147483647, %v2971_v41  ;;  %1276 = vst.msk [vmem:[#allocation4 + $0x8] sm:$0xff] %vm56_vm0, %v2990_v35  ;;  %v1178_v60 = vand.u32 2147483648, %v2971_v41  ;;  %v1286_v61 = vsel %vm56_vm0, %v2990_v35, 0.0 }
 0x7f5   :  { %vm1237_vm5 = vcmp.ge.f32.partialorder %v1229_v10, 1.0  ;;  %v1155_v1 = vmul.f32 %v1948_v19, %v1154_v32  ;;  %v1073_v36 = vsub.f32 %v1017_v54, %v2902_v27  ;;  %1287 = vadd.xlane.f32.xlu1 %v1286_v61  ;;  %vm1172_vm2 = vweird.f32 %v2971_v41 }
 0x7f6   :  { %v1245_v26 = vsel %vm1237_vm5, %v1229_v10, 0.1  ;;  %v971_v55 = vpop.trf.xlu2  ;;  %v1179_v22 = vor.u32 1.1754944e-38, %v1178_v60  ;;  %vm1177_vm4 = vcmp.eq.f32.partialorder %v1176_v58, 8.507059e+37  ;;  %v1985_v10 = vld [vmem:[%s3327_s1 + $0x20] sm:$0xff] }
 0x7f7   :  { %v1950_v11 = vpop.eup %1949  ;;  %v1253_v39 = vmul.f32 %v1245_v26, %v2926_v31  ;;  %v1156_v8 = vadd.f32 %v1948_v19, %v1155_v1  ;;  %v987_v5 = vadd.f32 %v971_v55, %v2899_v18  ;;  %v1983_v31 = vld [vmem:[%s3327_s1 + $0x10] sm:$0xff]  ;;  %v1831_v59 = vmul.f32 -1.442695, %v1073_v36  ;;  %v1986_v36 = vld [vmem:[%s3327_s1 + $0x28] sm:$0xff] }
 0x7f8   :  { %v1952_v33 = vpop.eup %1951  ;;  %v2985_v38 = vadd.f32 1.0, %v1950_v11 }
 0x7f9   :  { %v2997_v27 = vadd.f32 %v1983_v31, %v1253_v39  ;;  %1269 = vst.msk [vmem:[#allocation2 + $0x10] sm:$0xff] %vm56_vm0, %v1253_v39  ;;  %v1160_v9 = vsel %vm1159_vm12, %v1948_v19, %v1156_v8  ;;  %v1168_v53 = vmul.f32 %v1952_v33, %v2971_v41  ;;  %v3010_v62 = vmul.f32 0.5, %v987_v5 }
 0x7fa   :  { %v1165_v57 = vsel %vm1162_vm13, %v1164_v24, %v1160_v9  ;;  %1953 = vrcp.f32 %v2985_v38  ;;  %vm1173_vm15 = vweird.f32 %v1952_v33  ;;  %v1193_v4 = vand.u32 2147483648, %v2985_v38 }
 0x7fb   :  { %1277 = vst.msk [vmem:[#allocation4 + $0x10] sm:$0xff] %vm56_vm0, %v2997_v27  ;;  %v1230_v18 = vmul.f32 2.0, %v1165_v57  ;;  %v1169_v52 = vsub.f32 1.0, %v1168_v53  ;;  %v1289_v47 = vsel %vm56_vm0, %v2997_v27, 0.0  ;;  %1955 = vpow2.f32 %v1831_v59  ;;  %vm1174_vm3 = vmor %vm1172_vm2, %vm1173_vm15 }
 0x7fc   :  { %1290 = vadd.xlane.f32.xlu2 %v1289_v47  ;;  %vm1007_vm1 = vcmp.gt.f32.partialorder %v3010_v62, 0.0  ;;  %v1191_v15 = vand.u32 2147483647, %v2985_v38  ;;  %vm1187_vm5 = vweird.f32 %v2985_v38  ;;  %v1194_v3 = vor.u32 1.1754944e-38, %v1193_v4  ;;  %v1992_v4 = vld [vmem:[%s3326_s0 + $0x18] sm:$0xff] }
 0x7fd   :  { %vm1238_vm14 = vcmp.ge.f32.partialorder %v1230_v18, 1.0  ;;  %v1170_v13 = vmul.f32 %v1952_v33, %v1169_v52  ;;  %v1018_v42 = vsel %vm1007_vm1, %v2914_v17, 0.0 }
 0x7fe   :  { %v1246_v28 = vsel %vm1238_vm14, %v1230_v18, 0.1  ;;  %v1074_v29 = vsub.f32 %v1018_v42, %v2911_v2  ;;  %vm1192_vm8 = vcmp.eq.f32.partialorder %v1191_v15, 8.507059e+37  ;;  %v1995_v15 = vld [vmem:[%s3326_s0 + $0x30] sm:$0xff] }
 0x7ff   :  { %v1254_v7 = vmul.f32 %v1246_v28, %v2931_v46  ;;  %v1171_v21 = vadd.f32 %v1952_v33, %v1170_v13 }
 0x800   :  { %v1954_v14 = vpop.eup %1953  ;;  %v1832_v40 = vmul.f32 -1.442695, %v1074_v29 }
 0x801   :  { %v3022_v20 = vadd.f32 %v1984_v34, %v1254_v7  ;;  %1270 = vst.msk [vmem:[#allocation2 + $0x18] sm:$0xff] %vm56_vm0, %v1254_v7  ;;  %v1175_v23 = vsel %vm1174_vm3, %v1952_v33, %v1171_v21  ;;  %v1183_v46 = vmul.f32 %v1954_v14, %v2985_v38  ;;  %v1956_v17 = vpop.eup %1955  ;;  %vm1188_vm11 = vweird.f32 %v1954_v14  ;;  %v1987_v21 = vld [vmem:[%s3327_s1 + $0x30] sm:$0xff] }
 0x802   :  { %v1180_v49 = vsel %vm1177_vm4, %v1179_v22, %v1175_v23  ;;  %v1105_v44 = vadd.f32 1.0, %v1956_v17  ;;  %1957 = vpow2.f32 %v1832_v40  ;;  %vm1189_vm6 = vmor %vm1187_vm5, %vm1188_vm11  ;;  %v1988_v23 = vld [vmem:[%s3327_s1 + $0x38] sm:$0xff]  ;;  %v1478_v40 = vld [vmem:[%s3332_s6 + $0x10] sm:$0xff] }
 0x803   :  { %1278 = vst.msk [vmem:[#allocation4 + $0x18] sm:$0xff] %vm56_vm0, %v3022_v20  ;;  %v1231_v63 = vmul.f32 2.0, %v1180_v49  ;;  %v1184_v2 = vsub.f32 1.0, %v1183_v46  ;;  %v1292_v45 = vsel %vm56_vm0, %v3022_v20, 0.0  ;;  %v1477_v17 = vld [vmem:[%s3332_s6 + $0x8] sm:$0xff] }
 0x804   :  { %1293 = vadd.xlane.f32.xlu0 %v1292_v45  ;;  %1959 = vrcp.f32 %v1105_v44  ;;  %v1208_v8 = vand.u32 2147483648, %v1105_v44  ;;  %v1206_v38 = vand.u32 2147483647, %v1105_v44  ;;  %vm1202_vm13 = vweird.f32 %v1105_v44  ;;  %v1991_v45 = vld [vmem:[%s3326_s0 + $0x10] sm:$0xff] }
 0x805   :  { %vm1239_vm10 = vcmp.ge.f32.partialorder %v1231_v63, 1.0  ;;  %v1185_v19 = vmul.f32 %v1954_v14, %v1184_v2  ;;  %v1989_v2 = vld [vmem:[%s3326_s0] sm:$0xff] }
 0x806   :  { %v1247_v41 = vsel %vm1239_vm10, %v1231_v63, 0.1  ;;  %v1209_v31 = vor.u32 1.1754944e-38, %v1208_v8  ;;  %vm1207_vm15 = vcmp.eq.f32.partialorder %v1206_v38, 8.507059e+37  ;;  %v1476_v63 = vld [vmem:[%s3332_s6] sm:$0xff] }
 0x807   :  { %v1255_v48 = vmul.f32 %v1247_v41, %v2938_v6  ;;  %v1186_v43 = vadd.f32 %v1954_v14, %v1185_v19  ;;  %v1994_v19 = vld [vmem:[%s3326_s0 + $0x28] sm:$0xff]  ;;  %v1996_v41 = vld [vmem:[%s3326_s0 + $0x38] sm:$0xff] }
 0x808   :  { %v1958_v30 = vpop.eup %1957 }
 0x809   :  { %v3037_v32 = vadd.f32 %v1985_v10, %v1255_v48  ;;  %1271 = vst.msk [vmem:[#allocation2 + $0x20] sm:$0xff] %vm56_vm0, %v1255_v48  ;;  %v1190_v0 = vsel %vm1189_vm6, %v1954_v14, %v1186_v43  ;;  %v1106_v1 = vadd.f32 1.0, %v1958_v30 }
 0x80a   :  { %v1195_v51 = vsel %vm1192_vm8, %v1194_v3, %v1190_v0  ;;  %v1960_v54 = vpop.eup %1959 }
 0x80b   :  { %1279 = vst.msk [vmem:[#allocation4 + $0x20] sm:$0xff] %vm56_vm0, %v3037_v32  ;;  %v1232_v6 = vmul.f32 2.0, %v1195_v51  ;;  %v1295_v26 = vsel %vm56_vm0, %v3037_v32, 0.0  ;;  %v1198_v25 = vmul.f32 %v1960_v54, %v1105_v44  ;;  %1961 = vrcp.f32 %v1106_v1  ;;  %v1993_v44 = vld [vmem:[%s3326_s0 + $0x20] sm:$0xff] }
 0x80c   :  { %1296 = vadd.xlane.f32.xlu1 %v1295_v26  ;;  %vm1203_vm12 = vweird.f32 %v1960_v54  ;;  %v1223_v52 = vand.u32 2147483648, %v1106_v1  ;;  %v1221_v60 = vand.u32 2147483647, %v1106_v1  ;;  %vm1217_vm3 = vweird.f32 %v1106_v1 }
 0x80d   :  { %vm1240_vm9 = vcmp.ge.f32.partialorder %v1232_v6, 1.0  ;;  %v1199_v39 = vsub.f32 1.0, %v1198_v25  ;;  %vm1204_vm14 = vmor %vm1202_vm13, %vm1203_vm12 }
 0x80e   :  { %v1248_v55 = vsel %vm1240_vm9, %v1232_v6, 0.1  ;;  %v1224_v28 = vor.u32 1.1754944e-38, %v1223_v52  ;;  %vm1222_vm10 = vcmp.eq.f32.partialorder %v1221_v60, 8.507059e+37 }
 0x80f   :  { %v1256_v11 = vmul.f32 %v1248_v55, %v2948_v56  ;;  %v1200_v24 = vmul.f32 %v1960_v54, %v1199_v39 }
 0x811   :  { %v3048_v33 = vadd.f32 %v1986_v36, %v1256_v11  ;;  %1272 = vst.msk [vmem:[#allocation2 + $0x28] sm:$0xff] %vm56_vm0, %v1256_v11  ;;  %v1962_v12 = vpop.eup %1961  ;;  %v1201_v5 = vadd.f32 %v1960_v54, %v1200_v24 }
 0x812   :  { %v1213_v9 = vmul.f32 %v1962_v12, %v1106_v1  ;;  %vm1218_vm1 = vweird.f32 %v1962_v12 }
 0x813   :  { %1280 = vst.msk [vmem:[#allocation4 + $0x28] sm:$0xff] %vm56_vm0, %v3048_v33  ;;  %v1298_v56 = vsel %vm56_vm0, %v3048_v33, 0.0  ;;  %v1205_v53 = vsel %vm1204_vm14, %v1960_v54, %v1201_v5  ;;  %vm1219_vm4 = vmor %vm1217_vm3, %vm1218_vm1 }
 0x814   :  { %1299 = vadd.xlane.f32.xlu0 %v1298_v56  ;;  %v1210_v57 = vsel %vm1207_vm15, %v1209_v31, %v1205_v53  ;;  %v1214_v58 = vsub.f32 1.0, %v1213_v9  ;;  %v1893_v31 = vld [vmem:[%s3333_s7] ss:$0 sm:$0xff] }
 0x815   :  { %v1233_v18 = vmul.f32 2.0, %v1210_v57 }
 0x816   :  { %v1215_v59 = vmul.f32 %v1962_v12, %v1214_v58 }
 0x817   :  { %vm1241_vm2 = vcmp.ge.f32.partialorder %v1233_v18, 1.0 }
 0x818   :  { %v1249_v61 = vsel %vm1241_vm2, %v1233_v18, 0.1  ;;  %v1216_v47 = vadd.f32 %v1962_v12, %v1215_v59 }
 0x819   :  { %v1257_v13 = vmul.f32 %v1249_v61, %v2975_v50 }
 0x81a   :  { %v1220_v7 = vsel %vm1219_vm4, %v1962_v12, %v1216_v47 }
 0x81b   :  { %v3059_v42 = vadd.f32 %v1987_v21, %v1257_v13  ;;  %1273 = vst.msk [vmem:[#allocation2 + $0x30] sm:$0xff] %vm56_vm0, %v1257_v13  ;;  %v1225_v14 = vsel %vm1222_vm10, %v1224_v28, %v1220_v7 }
 0x81c   :  { %v1234_v22 = vmul.f32 2.0, %v1225_v14 }
 0x81d   :  { %1281 = vst.msk [vmem:[#allocation4 + $0x30] sm:$0xff] %vm56_vm0, %v3059_v42  ;;  %v1301_v50 = vsel %vm56_vm0, %v3059_v42, 0.0 }
 0x81e   :  { %vm1242_vm11 = vcmp.ge.f32.partialorder %v1234_v22, 1.0  ;;  %1302 = vadd.xlane.f32.xlu1 %v1301_v50 }
 0x81f   :  { %v1250_v29 = vsel %vm1242_vm11, %v1234_v22, 0.1 }
 0x820   :  { %v1258_v34 = vmul.f32 %v1250_v29, %v3010_v62  ;;  %v1479_v62 = vld [vmem:[%s3332_s6 + $0x18] sm:$0xff] }
 0x822   :  { %v3070_v46 = vadd.f32 %v1988_v23, %v1258_v34  ;;  %1274 = vst.msk [vmem:[#allocation2 + $0x38] sm:$0xff] %vm56_vm0, %v1258_v34 }
 0x823   :  { %1758 = dma.vmem_to_hbm [thread:$0]  %s1751_s17, 1024, %s1753_s16, [#allocation3], %s2053_s18, %s2053_s18, %s2054_s19  }
 0x824   :  { %1282 = vst.msk [vmem:[#allocation4 + $0x38] sm:$0xff] %vm56_vm0, %v3070_v46  ;;  %1833 = vmatpush.xpose.msk.msrb.mxu0 %vm56_vm0, %v3070_v46  ;;  %v1304_v49 = vsel %vm56_vm0, %v3070_v46, 0.0 }
 0x825   :  { %1305 = vadd.xlane.f32.xlu0 %v1304_v49  ;;  %1771 = dma.vmem_to_hbm [thread:$0]  %s1764_s20, 1024, %s1766_s22, [#allocation5], %s2053_s18, %s2053_s18, %s2054_s19  }
 0x828   :  { %1834 = vmatpush.xpose.msk.msrb.mxu0 %vm56_vm0, %v3059_v42 }
 0x82c   :  { %1835 = vmatpush.xpose.msk.msrb.mxu0 %vm56_vm0, %v3048_v33 }
 0x830   :  { %1836 = vmatpush.xpose.msk.msrb.mxu0 %vm56_vm0, %v3037_v32 }
 0x834   :  { %1837 = vmatpush.xpose.msk.msrb.mxu0 %vm56_vm0, %v3022_v20 }
 0x838   :  { %1838 = vmatpush.xpose.msk.msrb.mxu0 %vm56_vm0, %v2997_v27 }
 0x83c   :  { %1839 = vmatpush.xpose.msk.msrb.mxu0 %vm56_vm0, %v2990_v35 }
 0x840   :  { %1840 = vmatpush.xpose.msk.msrb.mxu0 %vm56_vm0, %v2961_v37 }
 0x843   :  { %1841 = vmatmul.msk.f32.vlgmr.msrb.gmra.mxu0 %vm56_vm0, %v2049_v16  ;;  %v1990_v16 = vld [vmem:[%s3326_s0 + $0x8] sm:$0xff] }
 0x844   :  { %1520 = vmatpush.msra.mxu0 %v1479_v62 }
 0x846   :  { %1521 = vmatpush.msra.mxu0 %v1478_v40 }
 0x848   :  { %1522 = vmatpush.msra.mxu0 %v1477_v17 }
 0x84a   :  { %1523 = vmatpush.msra.mxu0 %v1476_v63 }
 0x84b   :  { %1842 = vmatmul.msk.f32.vlgmr.msra.gmra.mxu0 %vm399_vm7, %v1989_v2 }
 0x853   :  { %1843 = vmatmul.msk.f32.gmra.mxu0 %vm399_vm7, %v1990_v16 }
 0x85b   :  { %1844 = vmatmul.msk.f32.gmra.mxu0 %vm399_vm7, %v1991_v45 }
 0x860   :  { %v1285_v30 = vpop.xlane.xlu0 %1284 }
 0x861   :  { %vm1365_vm9 = vweird.f32 %v1285_v30  ;;  %vm1351_vm14 = vcmp.gt.f32.partialorder %v1285_v30, 0.0 }
 0x863   :  { %1845 = vmatmul.msk.f32.gmra.mxu0 %vm399_vm7, %v1992_v4 }
 0x868   :  { %v3143_v1 = vpop.xlane.xlu1 %1287 }
 0x869   :  { %vm1375_vm1 = vweird.f32 %v3143_v1  ;;  %vm1352_vm3 = vcmp.gt.f32.partialorder %v3143_v1, 0.0 }
 0x86b   :  { %1846 = vmatmul.msk.f32.gmra.mxu0 %vm399_vm7, %v1993_v44 }
 0x86f   :  { %v3146_v8 = vpop.xlane.xlu2 %1290 }
 0x870   :  { %vm1385_vm10 = vweird.f32 %v3146_v8 }
 0x873   :  { %1847 = vmatmul.msk.f32.gmra.mxu0 %vm399_vm7, %v1994_v19 }
 0x877   :  { %v3157_v57 = vpop.xlane.xlu0 %1293 }
 0x87b   :  { %1848 = vmatmul.msk.f32.gmra.mxu0 %vm399_vm7, %v1995_v15 }
 0x87f   :  { %v3165_v29 = vpop.xlane.xlu1 %1296 }
 0x883   :  { %1849 = vmatmul.msk.f32.gmra.mxu0 %vm399_vm7, %v1996_v41 }
 0x8c0   :  { %v1348_v48 = vpop.f32.mrf.mxu0 }
 0x8c1   :  { %1963 = vrsqrt.f32 %v1348_v48  ;;  %vm1454_vm6 = vweird.f32 %v1348_v48  ;;  %vm1447_vm13 = vcmp.gt.f32.partialorder %v1348_v48, 0.0 }
 0x8c2   :  { %1965 = vrsqrt.f32 %v1285_v30 }
 0x8c3   :  { %1967 = vrsqrt.f32 %v3143_v1 }
 0x8c4   :  { %1969 = vrsqrt.f32 %v3146_v8 }
 0x8c5   :  { %1971 = vrsqrt.f32 %v3157_v57 }
 0x8c6   :  { %1973 = vrsqrt.f32 %v3165_v29 }
 0x8c7   :  { %v1964_v6 = vpop.eup %1963 }
 0x8c8   :  { %v3139_v43 = vpop.f32.mrf.mxu0  ;;  %v1966_v54 = vpop.eup %1965  ;;  %v1449_v25 = vmul.f32 %v1964_v6, %v1348_v48  ;;  %vm1455_vm7 = vweird.f32 %v1964_v6 }
 0x8c9   :  { %v1360_v55 = vmul.f32 %v1966_v54, %v1285_v30  ;;  %v3148_v24 = vpop.eup %1967  ;;  %vm1366_vm5 = vweird.f32 %v1966_v54  ;;  %vm1456_vm8 = vmor %vm1454_vm6, %vm1455_vm7  ;;  %v1526_v44 = vadd.f32 %v1893_v31, %v3139_v43  ;;  %v3182_v48 = vpop.xlane.xlu0 %1299  ;;  %vm1353_vm7 = vcmp.gt.f32.partialorder %v3146_v8, 0.0 }
 0x8ca   :  { %v1450_v11 = vmul.f32 %v1964_v6, %v1449_v25  ;;  %v1370_v5 = vmul.f32 %v3148_v24, %v3143_v1  ;;  %v3159_v18 = vpop.eup %1969  ;;  %vm1367_vm12 = vmor %vm1365_vm9, %vm1366_vm5  ;;  %vm1376_vm15 = vweird.f32 %v3148_v24  ;;  %1975 = vrsqrt.f32 %v3182_v48 }
 0x8cb   :  { %v1361_v39 = vmul.f32 %v1966_v54, %v1360_v55  ;;  %v1380_v13 = vmul.f32 %v3159_v18, %v3146_v8  ;;  %v3167_v34 = vpop.eup %1971  ;;  %vm1377_vm2 = vmor %vm1375_vm1, %vm1376_vm15  ;;  %vm1386_vm4 = vweird.f32 %v3159_v18  ;;  %vm1395_vm6 = vweird.f32 %v3157_v57 }
 0x8cc   :  { %v1451_v38 = vmul.f32 0.5, %v1450_v11  ;;  %v1371_v53 = vmul.f32 %v3148_v24, %v1370_v5  ;;  %v1390_v2 = vmul.f32 %v3167_v34, %v3157_v57  ;;  %vm1387_vm11 = vmor %vm1385_vm10, %vm1386_vm4  ;;  %vm1396_vm5 = vweird.f32 %v3167_v34 }
 0x8cd   :  { %v1362_v12 = vmul.f32 0.5, %v1361_v39  ;;  %v1381_v50 = vmul.f32 %v3159_v18, %v1380_v13  ;;  %vm1354_vm9 = vcmp.gt.f32.partialorder %v3157_v57, 0.0  ;;  %vm1355_vm15 = vcmp.gt.f32.partialorder %v3165_v29, 0.0 }
 0x8ce   :  { %v1452_v56 = vsub.f32 1.5, %v1451_v38  ;;  %v1372_v47 = vmul.f32 0.5, %v1371_v53  ;;  %v1391_v41 = vmul.f32 %v3167_v34, %v1390_v2  ;;  %vm1356_vm4 = vcmp.gt.f32.partialorder %v3182_v48, 0.0 }
 0x8cf   :  { %v1363_v9 = vsub.f32 1.5, %v1362_v12  ;;  %v1382_v63 = vmul.f32 0.5, %v1381_v50 }
 0x8d0   :  { %v3141_v3 = vpop.f32.mrf.mxu0  ;;  %v1453_v59 = vmul.f32 %v1964_v6, %v1452_v56  ;;  %v1373_v22 = vsub.f32 1.5, %v1372_v47  ;;  %v1623_v47 = vld [vmem:[%s3334_s8 + $0x8] sm:$0xff] }
 0x8d1   :  { %v1364_v61 = vmul.f32 %v1966_v54, %v1363_v9  ;;  %v1529_v45 = vadd.f32 %v1893_v31, %v3141_v3  ;;  %v1383_v15 = vsub.f32 1.5, %v1382_v63  ;;  %v1974_v3 = vpop.eup %1973  ;;  %v1306_v5 = vpop.xlane.xlu0 %1305  ;;  %1667 = vmatpush.msrb.mxu2 %v1623_v47 }
 0x8d2   :  { %v1457_v7 = vsel %vm1456_vm8, %v1964_v6, %v1453_v59  ;;  %v1374_v17 = vmul.f32 %v3148_v24, %v1373_v22  ;;  %v1400_v30 = vmul.f32 %v1974_v3, %v3165_v29  ;;  %v1976_v55 = vpop.eup %1975  ;;  %vm1397_vm8 = vmor %vm1395_vm6, %vm1396_vm5 }
 0x8d3   :  { %v1368_v14 = vsel %vm1367_vm12, %v1966_v54, %v1364_v61  ;;  %v1458_v23 = vsel %vm1447_vm13, %v1457_v7, 0.0  ;;  %v1384_v43 = vmul.f32 %v3159_v18, %v1383_v15  ;;  %v3197_v54 = vpop.xlane.xlu1 %1302  ;;  %vm1406_vm12 = vweird.f32 %v1974_v3 }
 0x8d4   :  { %v1439_v62 = vsel %vm1351_vm14, %v1368_v14, 0.0  ;;  %v3174_v16 = vperm.slane %v1458_v23, 0  ;;  %v1378_v19 = vsel %vm1377_vm2, %v3148_v24, %v1374_v17  ;;  %1977 = vrsqrt.f32 %v3197_v54 }
 0x8d5   :  { %v1459_v4 = vmul.f32 %v1439_v62, %v2961_v37  ;;  %v1440_v37 = vsel %vm1352_vm3, %v1378_v19, 0.0  ;;  %v1388_v6 = vsel %vm1387_vm11, %v3159_v18, %v1384_v43  ;;  %1979 = vrsqrt.f32 %v1306_v5 }
 0x8d6   :  { %v1441_v11 = vsel %vm1353_vm7, %v1388_v6, 0.0  ;;  %vm1405_vm13 = vweird.f32 %v3165_v29  ;;  %vm1416_vm1 = vweird.f32 %v1976_v55  ;;  %vm1415_vm2 = vweird.f32 %v3182_v48 }
 0x8d7   :  { %v1461_v24 = vmul.f32 %v1441_v11, %v2997_v27  ;;  %vm1407_vm14 = vmor %vm1405_vm13, %vm1406_vm12  ;;  %vm1425_vm11 = vweird.f32 %v3197_v54  ;;  %vm1357_vm5 = vcmp.gt.f32.partialorder %v3197_v54, 0.0  ;;  %vm1358_vm12 = vcmp.gt.f32.partialorder %v1306_v5, 0.0 }
 0x8d8   :  { %v1531_v10 = vpop.f32.mrf.mxu0  ;;  %vm1417_vm3 = vmor %vm1415_vm2, %vm1416_vm1  ;;  %vm1628_vm13 = vcmask 130048  }
 0x8d9   :  { %v1532_v40 = vadd.f32 %v1893_v31, %v1531_v10  ;;  %v3185_v10 = vmul.f32 %v3174_v16, %v1459_v4  ;;  %v3213_v56 = vmul.f32 %v3174_v16, %v1461_v24 }
 0x8e0   :  { %v1534_v0 = vpop.f32.mrf.mxu0 }
 0x8e1   :  { %v1535_v49 = vadd.f32 %v1893_v31, %v1534_v0  ;;  %v1392_v0 = vmul.f32 0.5, %v1391_v41 }
 0x8e3   :  { %v1393_v1 = vsub.f32 1.5, %v1392_v0 }
 0x8e8   :  { %v1537_v51 = vpop.f32.mrf.mxu0 }
 0x8e9   :  { %v1538_v21 = vadd.f32 %v1893_v31, %v1537_v51  ;;  %v1460_v51 = vmul.f32 %v1440_v37, %v2990_v35  ;;  %v1394_v35 = vmul.f32 %v3167_v34, %v1393_v1 }
 0x8eb   :  { %v3200_v25 = vmul.f32 %v3174_v16, %v1460_v51  ;;  %v1398_v8 = vsel %vm1397_vm8, %v3167_v34, %v1394_v35  ;;  %vm1435_vm8 = vweird.f32 %v1306_v5 }
 0x8ec   :  { %v1442_v9 = vsel %vm1354_vm9, %v1398_v8, 0.0 }
 0x8ed   :  { %v1462_v18 = vmul.f32 %v1442_v9, %v3022_v20 }
 0x8ef   :  { %v3222_v57 = vmul.f32 %v3174_v16, %v1462_v18 }
 0x8f0   :  { %v1540_v26 = vpop.f32.mrf.mxu0 }
 0x8f1   :  { %v1541_v28 = vadd.f32 %v1893_v31, %v1540_v26  ;;  %v1401_v26 = vmul.f32 %v1974_v3, %v1400_v30 }
 0x8f3   :  { %v1402_v39 = vmul.f32 0.5, %v1401_v26 }
 0x8f5   :  { %v1403_v38 = vsub.f32 1.5, %v1402_v39 }
 0x8f7   :  { %v1404_v27 = vmul.f32 %v1974_v3, %v1403_v38 }
 0x8f8   :  { %v1543_v36 = vpop.f32.mrf.mxu0 }
 0x8f9   :  { %v1544_v60 = vadd.f32 %v1893_v31, %v1543_v36  ;;  %v1410_v36 = vmul.f32 %v1976_v55, %v3182_v48 }
 0x8fb   :  { %v1411_v12 = vmul.f32 %v1976_v55, %v1410_v36 }
 0x8fd   :  { %v1412_v53 = vmul.f32 0.5, %v1411_v12 }
 0x8ff   :  { %v1413_v59 = vsub.f32 1.5, %v1412_v53 }
 0x900   :  { %v1546_v58 = vpop.f32.mrf.mxu0 }
 0x901   :  { %v1547_v52 = vadd.f32 %v1893_v31, %v1546_v58  ;;  %v1978_v31 = vpop.eup %1977  ;;  %v1414_v20 = vmul.f32 %v1976_v55, %v1413_v59 }
 0x902   :  { %v1420_v58 = vmul.f32 %v1978_v31, %v3197_v54  ;;  %v1980_v61 = vpop.eup %1979  ;;  %vm1426_vm10 = vweird.f32 %v1978_v31 }
 0x903   :  { %1581 = vmatpush.msrb.mxu1 %v1547_v52  ;;  %v1408_v52 = vsel %vm1407_vm14, %v1974_v3, %v1404_v27  ;;  %v1430_v7 = vmul.f32 %v1980_v61, %v1306_v5  ;;  %v1418_v14 = vsel %vm1417_vm3, %v1976_v55, %v1414_v20  ;;  %vm1427_vm7 = vmor %vm1425_vm11, %vm1426_vm10  ;;  %vm1436_vm6 = vweird.f32 %v1980_v61  ;;  %v1894_v5 = vld [vmem:[%s3335_s9] ss:$0 sm:$0xff] }
 0x904   :  { %v1443_v13 = vsel %vm1355_vm15, %v1408_v52, 0.0  ;;  %v1444_v34 = vsel %vm1356_vm4, %v1418_v14, 0.0  ;;  %vm1437_vm9 = vmor %vm1435_vm8, %vm1436_vm6 }
 0x905   :  { %1582 = vmatpush.msrb.mxu1 %v1544_v60  ;;  %v1421_v60 = vmul.f32 %v1978_v31, %v1420_v58  ;;  %v1431_v50 = vmul.f32 %v1980_v61, %v1430_v7 }
 0x907   :  { %1583 = vmatpush.msrb.mxu1 %v1541_v28  ;;  %v1422_v28 = vmul.f32 0.5, %v1421_v60 }
 0x909   :  { %1584 = vmatpush.msrb.mxu1 %v1538_v21  ;;  %v1463_v21 = vmul.f32 %v1443_v13, %v3037_v32  ;;  %v1423_v22 = vsub.f32 1.5, %v1422_v28  ;;  %v1464_v32 = vmul.f32 %v1444_v34, %v3048_v33 }
 0x90b   :  { %1585 = vmatpush.msrb.mxu1 %v1535_v49  ;;  %v3233_v29 = vmul.f32 %v3174_v16, %v1463_v21  ;;  %v1424_v23 = vmul.f32 %v1978_v31, %v1423_v22  ;;  %v1432_v49 = vmul.f32 0.5, %v1431_v50  ;;  %v3241_v17 = vmul.f32 %v3174_v16, %v1464_v32 }
 0x90d   :  { %1586 = vmatpush.msrb.mxu1 %v1532_v40  ;;  %v1428_v62 = vsel %vm1427_vm7, %v1978_v31, %v1424_v23  ;;  %v1433_v40 = vsub.f32 1.5, %v1432_v49 }
 0x90e   :  { %v1445_v63 = vsel %vm1357_vm5, %v1428_v62, 0.0 }
 0x90f   :  { %1587 = vmatpush.msrb.mxu1 %v1529_v45  ;;  %v1434_v2 = vmul.f32 %v1980_v61, %v1433_v40  ;;  %v1465_v45 = vmul.f32 %v1445_v63, %v3059_v42  ;;  %v1622_v42 = vld [vmem:[%s3334_s8] sm:$0xff] }
 0x910   :  { %1668 = vmatpush.msrb.mxu2 %v1622_v42 }
 0x911   :  { %1588 = vmatpush.msrb.mxu1 %v1526_v44  ;;  %v1438_v4 = vsel %vm1437_vm9, %v1980_v61, %v1434_v2  ;;  %v3248_v33 = vmul.f32 %v3174_v16, %v1465_v45 }
 0x912   :  { %1850 = vmatmul.msk.f32.vlgmr.msrb.gmra.mxu1 %vm56_vm0, %v3185_v10  ;;  %v1446_v44 = vsel %vm1358_vm12, %v1438_v4, 0.0 }
 0x913   :  { %v1466_v19 = vmul.f32 %v1446_v44, %v3070_v46 }
 0x915   :  { %v3254_v15 = vmul.f32 %v3174_v16, %v1466_v19 }
 0x91a   :  { %1851 = vmatmul.msk.f32.gmra.mxu1 %vm56_vm0, %v3200_v25 }
 0x922   :  { %1852 = vmatmul.msk.f32.gmra.mxu1 %vm56_vm0, %v3213_v56 }
 0x92a   :  { %1853 = vmatmul.msk.f32.gmra.mxu1 %vm56_vm0, %v3222_v57 }
 0x932   :  { %1854 = vmatmul.msk.f32.gmra.mxu1 %vm56_vm0, %v3233_v29 }
 0x93a   :  { %1855 = vmatmul.msk.f32.gmra.mxu1 %vm56_vm0, %v3241_v17 }
 0x942   :  { %1856 = vmatmul.msk.f32.gmra.mxu1 %vm56_vm0, %v3248_v33 }
 0x94a   :  { %1857 = vmatmul.msk.f32.gmra.mxu1 %vm56_vm0, %v3254_v15 }
 0x98f   :  { %v1590_v41 = vpop.f32.mrf.mxu1 }
 0x990   :  { %v1614_v48 = vmax.f32 %v1590_v41, 0.0 }
 0x992   :  { %1858 = vmatmul.msk.f32.vlgmr.msrb.gmra.mxu2 %vm1628_vm13, %v1614_v48 }
 0x997   :  { %v1593_v3 = vpop.f32.mrf.mxu1 }
 0x998   :  { %v1615_v37 = vmax.f32 %v1593_v3, 0.0 }
 0x99a   :  { %1859 = vmatmul.msk.f32.gmra.mxu2 %vm1628_vm13, %v1615_v37 }
 0x99f   :  { %v1596_v46 = vpop.f32.mrf.mxu1 }
 0x9a0   :  { %v1616_v16 = vmax.f32 %v1596_v46, 0.0 }
 0x9a2   :  { %1860 = vmatmul.msk.f32.gmra.mxu2 %vm1628_vm13, %v1616_v16 }
 0x9a7   :  { %v1599_v43 = vpop.f32.mrf.mxu1 }
 0x9a8   :  { %v1617_v0 = vmax.f32 %v1599_v43, 0.0 }
 0x9aa   :  { %1861 = vmatmul.msk.f32.gmra.mxu2 %vm1628_vm13, %v1617_v0 }
 0x9af   :  { %v1602_v30 = vpop.f32.mrf.mxu1 }
 0x9b0   :  { %v1618_v51 = vmax.f32 %v1602_v30, 0.0 }
 0x9b2   :  { %1862 = vmatmul.msk.f32.gmra.mxu2 %vm1628_vm13, %v1618_v51 }
 0x9b7   :  { %v1605_v6 = vpop.f32.mrf.mxu1 }
 0x9b8   :  { %v1619_v1 = vmax.f32 %v1605_v6, 0.0 }
 0x9ba   :  { %1863 = vmatmul.msk.f32.gmra.mxu2 %vm1628_vm13, %v1619_v1 }
 0x9bf   :  { %v1608_v26 = vpop.f32.mrf.mxu1 }
 0x9c0   :  { %v1620_v54 = vmax.f32 %v1608_v26, 0.0 }
 0x9c2   :  { %1864 = vmatmul.msk.f32.gmra.mxu2 %vm1628_vm13, %v1620_v54 }
 0x9c7   :  { %v1611_v55 = vpop.f32.mrf.mxu1 }
 0x9c8   :  { %v1621_v11 = vmax.f32 %v1611_v55, 0.0 }
 0x9ca   :  { %1865 = vmatmul.msk.f32.gmra.mxu2 %vm1628_vm13, %v1621_v11 }
 0xa15   :  { %v1670_v35 = vpop.f32.mrf.mxu2 }
 0xa16   :  { %v1671_v60 = vadd.f32 %v1894_v5, %v1670_v35 }
 0xa1d   :  { %v1673_v39 = vpop.f32.mrf.mxu2 }
 0xa1e   :  { %v1674_v59 = vadd.f32 %v1894_v5, %v1673_v39 }
 0xa25   :  { %v1676_v36 = vpop.f32.mrf.mxu2 }
 0xa26   :  { %v1677_v52 = vadd.f32 %v1894_v5, %v1676_v36 }
 0xa2d   :  { %v1679_v24 = vpop.f32.mrf.mxu2 }
 0xa2e   :  { %v1680_v18 = vadd.f32 %v1894_v5, %v1679_v24 }
 0xa35   :  { %v1682_v8 = vpop.f32.mrf.mxu2 }
 0xa36   :  { %v1683_v58 = vadd.f32 %v1894_v5, %v1682_v8 }
 0xa3d   :  { %v1685_v38 = vpop.f32.mrf.mxu2 }
 0xa3e   :  { %v1686_v53 = vadd.f32 %v1894_v5, %v1685_v38 }
 0xa45   :  { %v1688_v12 = vpop.f32.mrf.mxu2 }
 0xa46   :  { %v1689_v27 = vadd.f32 %v1894_v5, %v1688_v12 }
 0xa4d   :  { %v1691_v31 = vpop.f32.mrf.mxu2 }
 0xa4e   :  { %v1692_v9 = vadd.f32 %v1894_v5, %v1691_v31 }
 0xa50   :  { %1702 = vmatpush.msrb.mxu0 %v1692_v9  ;;  %1874 = vmatpush.msrb.mxu3 %v1692_v9 }
 0xa52   :  { %1703 = vmatpush.msrb.mxu0 %v1689_v27  ;;  %1875 = vmatpush.msrb.mxu3 %v1689_v27 }
 0xa54   :  { %1704 = vmatpush.msrb.mxu0 %v1686_v53  ;;  %1876 = vmatpush.msrb.mxu3 %v1686_v53 }
 0xa56   :  { %1705 = vmatpush.msrb.mxu0 %v1683_v58  ;;  %1877 = vmatpush.msrb.mxu3 %v1683_v58 }
 0xa58   :  { %1706 = vmatpush.msrb.mxu0 %v1680_v18  ;;  %1878 = vmatpush.msrb.mxu3 %v1680_v18 }
 0xa5a   :  { %1707 = vmatpush.msrb.mxu0 %v1677_v52  ;;  %1879 = vmatpush.msrb.mxu3 %v1677_v52 }
 0xa5c   :  { %1708 = vmatpush.msrb.mxu0 %v1674_v59  ;;  %1880 = vmatpush.msrb.mxu3 %v1674_v59 }
 0xa5e   :  { %1709 = vmatpush.msrb.mxu0 %v1671_v60  ;;  %1881 = vmatpush.msrb.mxu3 %v1671_v60 }
 0xa5f   :  { %1866 = vmatmul.msk.f32.vlgmr.msrb.gmra.mxu0 %vm56_vm0, %v3185_v10  ;;  %1867 = vmatmul.msk.f32.vlgmr.msrb.gmra.mxu3 %vm56_vm0, %v3200_v25 }
 0xa67   :  { %1868 = vmatmul.msk.f32.gmra.mxu3 %vm56_vm0, %v3213_v56 }
 0xa6f   :  { %1869 = vmatmul.msk.f32.gmra.mxu3 %vm56_vm0, %v3222_v57 }
 0xa77   :  { %1870 = vmatmul.msk.f32.gmra.mxu3 %vm56_vm0, %v3233_v29 }
 0xa7f   :  { %1871 = vmatmul.msk.f32.gmra.mxu3 %vm56_vm0, %v3241_v17 }
 0xa87   :  { %1872 = vmatmul.msk.f32.gmra.mxu3 %vm56_vm0, %v3248_v33 }
 0xa8f   :  { %1873 = vmatmul.msk.f32.gmra.mxu3 %vm56_vm0, %v3254_v15  ;;  %vm1735_vm0 = vcmask 64512  }
 0xadc   :  { %v1711_v10 = vpop.f32.mrf.mxu0 }
 0xadd   :  { %1736 = vst.msk [vmem:[%s3336_s10] sm:$0xff] %vm1735_vm0, %v1711_v10 }
 0xae2   :  { %v1714_v25 = vpop.f32.mrf.mxu3 }
 0xae3   :  { %1737 = vst.msk [vmem:[%s3336_s10 + $0x8] sm:$0xff] %vm1735_vm0, %v1714_v25 }
 0xaea   :  { %v1717_v56 = vpop.f32.mrf.mxu3 }
 0xaeb   :  { %1738 = vst.msk [vmem:[%s3336_s10 + $0x10] sm:$0xff] %vm1735_vm0, %v1717_v56 }
 0xaf2   :  { %v1720_v57 = vpop.f32.mrf.mxu3 }
 0xaf3   :  { %1739 = vst.msk [vmem:[%s3336_s10 + $0x18] sm:$0xff] %vm1735_vm0, %v1720_v57 }
 0xafa   :  { %v1723_v61 = vpop.f32.mrf.mxu3 }
 0xafb   :  { %1740 = vst.msk [vmem:[%s3336_s10 + $0x20] sm:$0xff] %vm1735_vm0, %v1723_v61 }
 0xb02   :  { %v1726_v47 = vpop.f32.mrf.mxu3 }
 0xb03   :  { %1741 = vst.msk [vmem:[%s3336_s10 + $0x28] sm:$0xff] %vm1735_vm0, %v1726_v47 }
 0xb0a   :  { %v1729_v13 = vpop.f32.mrf.mxu3 }
 0xb0b   :  { %1742 = vst.msk [vmem:[%s3336_s10 + $0x30] sm:$0xff] %vm1735_vm0, %v1729_v13 }
 0xb12   :  { %v1732_v20 = vpop.f32.mrf.mxu3 }
 0xb13   :  { %1743 = vst.msk [vmem:[%s3336_s10 + $0x38] sm:$0xff] %vm1735_vm0, %v1732_v20 }
 0xb14   :  { %2045 = dma.done.wait [#allocation3], 1024  }
 0xb15   :  { %2046 = vsyncadd [#allocation3], 4294966272 }
 0xb16   :  { %2047 = dma.done.wait [#allocation5], 1024  }
 0xb17   :  { %2048 = vsyncadd [#allocation5], 4294966272 }
 0xb18   :  { %1782 = vsyncpa [#allocation3], 1 }
 0xb19   :  { %1783 = vsyncpa [#allocation5], 1 }

</bundles_post_ra>
